<compile_context>
chip_gen: v6e
topology: v6e:2x2x1
jax: 0.10.0
libtpu: 0.0.40
codegen_flags: <defaults>
</compile_context>

<pallas_src>
import numpy as np
import jax
import jax.numpy as jnp
from jax import lax
from jax.experimental import pallas as pl
from jax.experimental.pallas import tpu as pltpu


# ----------------------------- fused Pallas kernel ---------------------------

def _build_kernel(num_layers, H, training):
    """Fused kernel: all GRU layers + dropout + h2o Linear+Tanh for one timestep,
    invoked over a (T, C_tiles) grid with VMEM-resident weights and a VMEM-carried
    hidden state."""

    def kernel(*refs):
        pos = 0
        gi0_ref = refs[pos]; pos += 1           # (1, B, 3H) gathered W_ih rows for step t
        in_mask_ref = None
        if training:
            in_mask_ref = refs[pos]; pos += 1   # (1, B, 1)  input-dropout scale for step t
        hidden_in_ref = refs[pos]; pos += 1     # (L, B, H)  initial hidden state
        b_i0_ref = refs[pos]; pos += 1          # (1, 3H)
        w_h0_ref = refs[pos]; pos += 1          # (H, 3H)
        b_h0_ref = refs[pos]; pos += 1          # (1, 3H)
        upper = []
        for _ in range(1, num_layers):
            hm = None
            if training:
                hm = refs[pos]; pos += 1        # (1, B, H)  hidden-dropout mask for step t
            w_cat = refs[pos]; pos += 1         # (2H, 4H)   packed [x|h] weights [r|z|n_x|n_h]
            b_cat = refs[pos]; pos += 1         # (1, 4H)
            upper.append((hm, w_cat, b_cat))
        w_o_ref = refs[pos]; pos += 1           # train: (1, H, B) | eval: (H, TILE_C)
        b_o_ref = refs[pos]; pos += 1           # train: (1, 1, B) | eval: (1, TILE_C)
        logit_ref = refs[pos]; pos += 1         # train: (1, B, B) | eval: (1, B, TILE_C)
        hidden_out_ref = refs[pos]; pos += 1    # (L, B, H)
        h_scr = refs[pos]; pos += 1             # VMEM (L, B, H) f32 hidden carry
        x_scr = refs[pos]; pos += 1             # VMEM (B, H)   f32 top-layer activation

        t = pl.program_id(0)
        c = pl.program_id(1)
        last_t = pl.num_programs(0) - 1
        last_c = pl.num_programs(1) - 1

        @pl.when(jnp.logical_and(t == 0, c == 0))
        def _():
            h_scr[...] = hidden_in_ref[...].astype(jnp.float32)

        # ---- GRU step: only once per timestep (first C tile) ----------------
        @pl.when(c == 0)
        def _():
            cdt = w_h0_ref.dtype
            # layer 0: one_hot(idx) @ W_ih == W_ih[idx, :] (gathered by the caller);
            # the per-row input-dropout scale commutes with the gather.
            gi = gi0_ref[0].astype(jnp.float32)
            if training:
                gi = gi * in_mask_ref[0]
            gi = gi + b_i0_ref[...]
            h_prev = h_scr[0]
            gh = jnp.dot(h_prev.astype(cdt), w_h0_ref[...],
                         preferred_element_type=jnp.float32) + b_h0_ref[...]
            r = jax.nn.sigmoid(gi[:, 0:H] + gh[:, 0:H])
            z = jax.nn.sigmoid(gi[:, H:2 * H] + gh[:, H:2 * H])
            n = jnp.tanh(gi[:, 2 * H:3 * H] + r * gh[:, 2 * H:3 * H])
            x = (1.0 - z) * n + z * h_prev
            h_scr[0] = x

            # layers >= 1: single (B,2H)@(2H,4H) dot (K=2H fills the 256-deep MXU).
            for l, (hm, w_cat_ref, b_cat_ref) in enumerate(upper, start=1):
                xd = x * hm[0] if training else x
                h_prev = h_scr[l]
                xh = jnp.concatenate([xd, h_prev], axis=1)              # (B, 2H)
                g = jnp.dot(xh.astype(w_cat_ref.dtype), w_cat_ref[...],
                            preferred_element_type=jnp.float32) + b_cat_ref[...]
                r = jax.nn.sigmoid(g[:, 0:H])
                z = jax.nn.sigmoid(g[:, H:2 * H])
                n = jnp.tanh(g[:, 2 * H:3 * H] + r * g[:, 3 * H:4 * H])
                x = (1.0 - z) * n + z * h_prev
                h_scr[l] = x

            x_scr[...] = x

        # ---- h2o projection + tanh on this C tile ---------------------------
        x = x_scr[...]
        if training:
            w_o = w_o_ref[0]                                            # (H, B) plain NN dot
            logits = jnp.dot(x.astype(w_o.dtype), w_o,
                             preferred_element_type=jnp.float32) + b_o_ref[0]
        else:
            logits = jnp.dot(x.astype(w_o_ref.dtype), w_o_ref[...],
                             preferred_element_type=jnp.float32) + b_o_ref[...]
        logit_ref[0] = jnp.tanh(logits).astype(logit_ref.dtype)

        # final hidden writeback (constant out index_map -> single HBM write)
        @pl.when(jnp.logical_and(t == last_t, c == last_c))
        def _():
            hidden_out_ref[...] = h_scr[...].astype(hidden_out_ref.dtype)

    return kernel


def _pick_tile_c(C, max_tile):
    """Largest multiple of 128 that divides C and is <= max_tile; else C."""
    if C <= 128 or C % 128 != 0:
        return C
    t = min((max_tile // 128) * 128, C)
    while t >= 128:
        if C % t == 0:
            return t
        t -= 128
    return C


# ----------------------------- model wrapper ---------------------------------

class GRU4RecPallas:
    def __init__(self, input_size, hidden_size, output_size, num_layers=1,
                 dropout_hidden=0.5, dropout_input=0.0, batch_size=50,
                 training=True, param_dtype=jnp.float32, eval_c_tile=512,
                 key=jax.random.PRNGKey(0)):
        assert input_size == output_size, \
            "GRU4REC one-hot embedding implies input_size == output_size"
        self.input_size = input_size
        self.hidden_size = hidden_size
        self.output_size = output_size
        self.num_layers = num_layers
        self.dropout_hidden = dropout_hidden
        self.dropout_input = dropout_input
        self.batch_size = batch_size
        self.training = training
        self.param_dtype = param_dtype
        self.eval_c_tile = eval_c_tile

        H = hidden_size
        H3 = 3 * H
        bound = 1.0 / np.sqrt(H)
        keys = jax.random.split(key, 4 * num_layers + 2)
        ki = 0

        def uinit(k, shape):
            return jax.random.uniform(k, shape, jnp.float32, -bound, bound)

        raw = []
        ref_layers = []
        for l in range(num_layers):
            in_dim = input_size if l == 0 else H
            w_ih = uinit(keys[ki], (H3, in_dim)); ki += 1   # PyTorch layout (3H, in)
            w_hh = uinit(keys[ki], (H3, H)); ki += 1
            b_ih = uinit(keys[ki], (H3,)); ki += 1
            b_hh = uinit(keys[ki], (H3,)); ki += 1
            raw.append((w_ih, w_hh, b_ih, b_hh))
            ref_layers.append(dict(w_i=w_ih.T, w_h=w_hh.T,
                                   b_i=b_ih.reshape(1, H3), b_h=b_hh.reshape(1, H3)))
        w_h2o = uinit(keys[ki], (output_size, H)); ki += 1   # PyTorch Linear layout (C, H)
        b_h2o = uinit(keys[ki], (output_size,)); ki += 1

        # Pure-f32 copies used by the unoptimized reference.
        self._ref_params = dict(layers=ref_layers, w_h2o_t=w_h2o.T, b_h2o=b_h2o)

        # ---- kernel-side parameters ------------------------------------------
        w_ih0, w_hh0, b_ih0, b_hh0 = raw[0]
        self.w_i0 = jnp.asarray(w_ih0.T, param_dtype)        # (C, 3H) gather source
        self.b_i0 = b_ih0.reshape(1, H3)
        self.w_h0 = jnp.asarray(w_hh0.T, param_dtype)        # (H, 3H)
        self.b_h0 = b_hh0.reshape(1, H3)

        # layers >= 1: pack [x|h] weights into (2H, 4H): columns [r | z | n_x | n_h]
        self.upper = []
        for l in range(1, num_layers):
            w_ih, w_hh, b_ih, b_hh = raw[l]
            wi = w_ih.T                                       # (H, 3H)
            wh = w_hh.T                                       # (H, 3H)
            zero = jnp.zeros((H, H), jnp.float32)
            top = jnp.concatenate([wi, zero], axis=1)                              # [r|z|n_x|0]
            bot = jnp.concatenate([wh[:, :2 * H], zero, wh[:, 2 * H:]], axis=1)    # [r|z|0|n_h]
            w_cat = jnp.concatenate([top, bot], axis=0)                            # (2H, 4H)
            b_cat = jnp.concatenate(
                [(b_ih[:2 * H] + b_hh[:2 * H]).reshape(1, 2 * H),
                 b_ih[2 * H:].reshape(1, H), b_hh[2 * H:].reshape(1, H)], axis=1)  # (1, 4H)
            self.upper.append(dict(w_cat=jnp.asarray(w_cat, param_dtype), b_cat=b_cat))

        # h2o stored pre-transposed (H, C): no per-call XLA transpose for eval,
        # and column gather gives the plain-NN (H, B) sampled projection for training.
        self.w_h2o_t = jnp.asarray(w_h2o.T, param_dtype)
        self.b_h2o = b_h2o

    def init_hidden(self):
        return jnp.zeros((self.num_layers, self.batch_size, self.hidden_size),
                         jnp.float32)

    # -- dropout masks (torch.bernoulli equivalent), shared by the Pallas path
    #    and the reference so the comparison is exact. One mask per timestep.
    def _dropout_masks(self, key, T):
        B, H, L = self.batch_size, self.hidden_size, self.num_layers
        in_mask = jnp.ones((T, B, 1), jnp.float32)
        hmasks = [jnp.ones((T, B, H), jnp.float32) for _ in range(max(L - 1, 0))]
        if self.training:
            if self.dropout_input > 0.0:
                keep = 1.0 - self.dropout_input
                key, sub = jax.random.split(key)
                in_mask = (jax.random.bernoulli(sub, keep, (T, B, 1))
                           .astype(jnp.float32) / keep)
            if self.dropout_hidden > 0.0:
                keep = 1.0 - self.dropout_hidden
                for l in range(L - 1):
                    key, sub = jax.random.split(key)
                    hmasks[l] = (jax.random.bernoulli(sub, keep, (T, B, H))
                                 .astype(jnp.float32) / keep)
        return in_mask, hmasks

    def _cost_estimate(self, T, logit_cols):
        B, H, L = self.batch_size, self.hidden_size, self.num_layers
        pb = jnp.dtype(self.param_dtype).itemsize
        flops = T * (2 * B * H * 3 * H
                     + (L - 1) * 2 * B * (2 * H) * (4 * H)
                     + 2 * B * H * logit_cols)
        transcendentals = T * (L * B * 3 * H + B * logit_cols)
        weight_bytes = pb * (H * 3 * H + (L - 1) * 2 * H * 4 * H)
        weight_bytes += pb * H * logit_cols * (T if self.training else 1)
        step_bytes = T * 4 * (B + (L - 1) * B * H + B * logit_cols) \
            + T * pb * B * 3 * H + 2 * 4 * L * B * H
        return pl.CostEstimate(flops=int(flops),
                               transcendentals=int(transcendentals),
                               bytes_accessed=int(weight_bytes + step_bytes))

    def _vmem_limit(self, tile_c, logit_cols):
        B, H, L = self.batch_size, self.hidden_size, self.num_layers
        pb = jnp.dtype(self.param_dtype).itemsize
        resident = pb * (H * 3 * H + (L - 1) * 2 * H * 4 * H) + 4 * (6 * H + (L - 1) * 4 * H)
        resident += 4 * (2 * 2 * L * B * H + L * B * H + B * H)   # hidden in/out + scratch
        step = 2 * (pb * B * 3 * H + 4 * B + (L - 1) * 4 * B * H)  # double-buffered per-step tiles
        if self.training:
            step += 2 * (pb * H * B + 4 * B)
        proj = 2 * (pb * H * tile_c + 4 * tile_c)                  # double-buffered W_h2o tile
        out = 2 * 4 * B * (logit_cols if self.training else tile_c)
        est = resident + step + proj + out
        return int(min(64 * 2 ** 20, max(32 * 2 ** 20, 2 * est)))

    # ------------------------------- forward ---------------------------------
    def forward_seq(self, input_seq, target_seq, hidden,
                    dropout_key=jax.random.PRNGKey(1)):
        """Run T session-parallel GRU4REC steps in one fused pallas_call.

        input_seq / target_seq: (T, B) int32; hidden: (L, B, H).
        Returns (logits (T,B,B) if training else (T,B,C), final hidden (L,B,H)).
        """
        L, B, H, C = (self.num_layers, self.batch_size,
                      self.hidden_size, self.output_size)
        H3 = 3 * H
        T = int(input_seq.shape[0])
        training = self.training
        in_mask_seq, hmask_seqs = self._dropout_masks(dropout_key, T)

        # layer-0 one-hot matmul -> row gather of the fused (C, 3H) W_ih; one XLA
        # gather for the whole sequence, pipelined per step into the kernel.
        # TODO(synk): for very large C move this in-kernel (scalar-prefetched
        # indices + per-row DMA from an HBM-resident weight).
        gi0_rows = jnp.take(self.w_i0, input_seq.reshape(-1), axis=0).reshape(T, B, H3)

        inputs = [gi0_rows]
        in_specs = [pl.BlockSpec((1, B, H3), lambda t, c: (t, 0, 0))]
        if training:
            inputs.append(in_mask_seq)
            in_specs.append(pl.BlockSpec((1, B, 1), lambda t, c: (t, 0, 0)))

        inputs += [hidden, self.b_i0, self.w_h0, self.b_h0]
        in_specs += [pl.BlockSpec((L, B, H), lambda t, c: (0, 0, 0)),
                     pl.BlockSpec((1, H3), lambda t, c: (0, 0)),
                     pl.BlockSpec((H, H3), lambda t, c: (0, 0)),
                     pl.BlockSpec((1, H3), lambda t, c: (0, 0))]

        for l in range(1, L):
            if training:
                inputs.append(hmask_seqs[l - 1])
                in_specs.append(pl.BlockSpec((1, B, H), lambda t, c: (t, 0, 0)))
            inputs += [self.upper[l - 1]["w_cat"], self.upper[l - 1]["b_cat"]]
            in_specs += [pl.BlockSpec((2 * H, 4 * H), lambda t, c: (0, 0)),
                         pl.BlockSpec((1, 4 * H), lambda t, c: (0, 0))]

        if training:
            # sampled projection: gather target COLUMNS of the (H, C) weight ->
            # per-step (H, B), so the kernel does a plain NN dot (no NT transpose).
            w_o = jnp.take(self.w_h2o_t, target_seq.reshape(-1), axis=1)
            w_o = w_o.reshape(H, T, B).transpose(1, 0, 2)                 # (T, H, B)
            b_o = jnp.take(self.b_h2o, target_seq.reshape(-1)).reshape(T, 1, B)
            logit_cols, tile_c, c_tiles = B, B, 1
            w_o_spec = pl.BlockSpec((1, H, B), lambda t, c: (t, 0, 0))
            b_o_spec = pl.BlockSpec((1, 1, B), lambda t, c: (t, 0, 0))
            logit_spec = pl.BlockSpec((1, B, B), lambda t, c: (t, 0, 0))
            logit_shape = (T, B, B)
        else:
            # full-vocab projection tiled over C (fits scoped VMEM, double-buffers
            # W_h2o tiles, lane-dense (B, TILE_C) logit stores).
            tile_c = _pick_tile_c(C, self.eval_c_tile)
            c_tiles = C // tile_c
            logit_cols = C
            w_o = self.w_h2o_t                                            # (H, C)
            b_o = self.b_h2o.reshape(1, C)
            w_o_spec = pl.BlockSpec((H, tile_c), lambda t, c: (0, c))
            b_o_spec = pl.BlockSpec((1, tile_c), lambda t, c: (0, c))
            logit_spec = pl.BlockSpec((1, B, tile_c), lambda t, c: (t, 0, c))
            logit_shape = (T, B, C)

        inputs += [w_o, b_o]
        in_specs += [w_o_spec, b_o_spec]

        out_shape = (jax.ShapeDtypeStruct(logit_shape, jnp.float32),
                     jax.ShapeDtypeStruct((L, B, H), jnp.float32))
        out_specs = (logit_spec,
                     pl.BlockSpec((L, B, H), lambda t, c: (0, 0, 0)))
        scratch_shapes = [pltpu.VMEM((L, B, H), jnp.float32),
                          pltpu.VMEM((B, H), jnp.float32)]

        kernel = _build_kernel(L, H, training)
        call = pl.pallas_call(
            kernel,
            out_shape=out_shape,
            grid_spec=pltpu.PrefetchScalarGridSpec(
                num_scalar_prefetch=0,
                grid=(T, c_tiles),
                in_specs=in_specs,
                out_specs=out_specs,
                scratch_shapes=scratch_shapes),
            compiler_params=pltpu.CompilerParams(
                # both axes carry a recurrence (hidden carry over t, x_scratch carry
                # over c within a step), so they must stay "arbitrary".
                dimension_semantics=("arbitrary", "arbitrary"),
                vmem_limit_bytes=self._vmem_limit(tile_c, logit_cols)),
            cost_estimate=self._cost_estimate(T, logit_cols),
        )
        # TODO(synk): inside a jitted train step, alias the incoming hidden buffer
        # to the hidden output (input_output_aliases) to drop the final (L,B,H)
        # copy; omitted here so the eagerly-reused `hidden` array stays valid.
        logit_seq, new_hidden = call(*inputs)
        return logit_seq, new_hidden

    def forward(self, input_idx, target, hidden, dropout_key=jax.random.PRNGKey(1)):
        """Single-step forward matching the original module's semantics."""
        logit_seq, new_hidden = self.forward_seq(input_idx[None], target[None],
                                                 hidden, dropout_key)
        return logit_seq[0], new_hidden

    # ----------------------- pure-JAX reference (unoptimized) -----------------
    def forward_seq_ref(self, input_seq, target_seq, hidden,
                        dropout_key=jax.random.PRNGKey(1)):
        H, C, L = self.hidden_size, self.output_size, self.num_layers
        hi = jax.lax.Precision.HIGHEST
        T = int(input_seq.shape[0])
        in_mask, hmasks = self._dropout_masks(dropout_key, T)
        ref = self._ref_params
        h = [hidden[l] for l in range(L)]
        logits = []
        for s in range(T):
            x = jax.nn.one_hot(input_seq[s], C, dtype=jnp.float32)
            if self.training:
                x = x * in_mask[s]
            for l in range(L):
                if l >= 1 and self.training:
                    x = x * hmasks[l - 1][s]
                p = ref["layers"][l]
                gi = jnp.dot(x, p["w_i"], precision=hi) + p["b_i"]
                gh = jnp.dot(h[l], p["w_h"], precision=hi) + p["b_h"]
                r = jax.nn.sigmoid(gi[:, :H] + gh[:, :H])
                z = jax.nn.sigmoid(gi[:, H:2 * H] + gh[:, H:2 * H])
                n = jnp.tanh(gi[:, 2 * H:] + r * gh[:, 2 * H:])
                h[l] = (1.0 - z) * n + z * h[l]
                x = h[l]
            lg = jnp.tanh(jnp.dot(x, ref["w_h2o_t"], precision=hi)
                          + ref["b_h2o"][None, :])
            if self.training:
                lg = lg[:, target_seq[s]]
            logits.append(lg)
        return jnp.stack(logits), jnp.stack(h)


# ----------------------------------- main -------------------------------------

if __name__ == "__main__":
    B = 8             # batch_size (sublane-aligned)
    N_ITEMS = 256     # input_size == output_size (one-hot item vocabulary)
    H = 128           # hidden_size: lane-dense (multiple of 128)
    NUM_LAYERS = 2    # exercises the packed [x|h] matmul + inter-layer dropout
    T = 5             # timesteps fused into one pallas_call

    key = jax.random.PRNGKey(0)
    k_param, k_in, k_tgt, k_hid = jax.random.split(key, 4)

    model = GRU4RecPallas(input_size=N_ITEMS, hidden_size=H, output_size=N_ITEMS,
                          num_layers=NUM_LAYERS, dropout_hidden=0.5,
                          dropout_input=0.25, batch_size=B, training=True,
                          param_dtype=jnp.float32, eval_c_tile=128, key=k_param)

    input_seq = jax.random.randint(k_in, (T, B), 0, N_ITEMS)
    target_seq = jax.random.randint(k_tgt, (T, B), 0, N_ITEMS)
    hidden = jax.random.uniform(k_hid, (NUM_LAYERS, B, H), jnp.float32, -0.5, 0.5)
    dkey = jax.random.PRNGKey(1)

    # --- training mode: fused T-step recurrence, sampled (T, B, B) logits ------
    logit, new_hidden = model.forward_seq(input_seq, target_seq, hidden, dkey)
    jax.block_until_ready((logit, new_hidden))
    logit_ref, hidden_ref = model.forward_seq_ref(input_seq, target_seq, hidden, dkey)
    assert logit.shape == (T, B, B), logit.shape
    assert new_hidden.shape == (NUM_LAYERS, B, H), new_hidden.shape
    np.testing.assert_allclose(np.asarray(logit), np.asarray(logit_ref),
                               rtol=3e-4, atol=1e-4)
    np.testing.assert_allclose(np.asarray(new_hidden), np.asarray(hidden_ref),
                               rtol=3e-4, atol=1e-4)

    # --- single-step forward (original module API) -----------------------------
    logit1, hidden1 = model.forward(input_seq[0], target_seq[0], hidden, dkey)
    jax.block_until_ready((logit1, hidden1))
    logit1_ref, hidden1_ref = model.forward_seq_ref(input_seq[:1], target_seq[:1],
                                                    hidden, dkey)
    assert logit1.shape == (B, B)
    np.testing.assert_allclose(np.asarray(logit1), np.asarray(logit1_ref[0]),
                               rtol=3e-4, atol=1e-4)
    np.testing.assert_allclose(np.asarray(hidden1), np.asarray(hidden1_ref),
                               rtol=3e-4, atol=1e-4)

    # --- eval mode: full-vocab logits, C tiled over a grid axis (2 x 128) ------
    model.training = False
    logit_e, hidden_e = model.forward_seq(input_seq, target_seq, hidden, dkey)
    jax.block_until_ready((logit_e, hidden_e))
    logit_e_ref, hidden_e_ref = model.forward_seq_ref(input_seq, target_seq,
                                                      hidden, dkey)
    assert logit_e.shape == (T, B, N_ITEMS), logit_e.shape
    np.testing.assert_allclose(np.asarray(logit_e), np.asarray(logit_e_ref),
                               rtol=3e-4, atol=1e-4)
    np.testing.assert_allclose(np.asarray(hidden_e), np.asarray(hidden_e_ref),
                               rtol=3e-4, atol=1e-4)

    # --- bfloat16 weights (halved weight DMA), f32 accumulation ----------------
    model_bf16 = GRU4RecPallas(input_size=N_ITEMS, hidden_size=H, output_size=N_ITEMS,
                               num_layers=NUM_LAYERS, dropout_hidden=0.5,
                               dropout_input=0.25, batch_size=B, training=True,
                               param_dtype=jnp.bfloat16, eval_c_tile=128, key=k_param)
    logit_b, hidden_b = model_bf16.forward_seq(input_seq, target_seq, hidden, dkey)
    jax.block_until_ready((logit_b, hidden_b))
    np.testing.assert_allclose(np.asarray(logit_b), np.asarray(logit_ref),
                               rtol=5e-2, atol=5e-2)
    np.testing.assert_allclose(np.asarray(hidden_b), np.asarray(hidden_ref),
                               rtol=5e-2, atol=5e-2)

    print("KERNEL_OK")
</pallas_src>

<mosaic_0001>
module attributes {stable_mosaic.version = 11 : i64} {
  func.func @kernel(%arg0: i32, %arg1: i32, %arg2: memref<1x8x384xf32, #tpu.memory_space<vmem>>, %arg3: memref<1x8x1xf32, #tpu.memory_space<vmem>>, %arg4: memref<2x8x128xf32, #tpu.memory_space<vmem>>, %arg5: memref<1x384xf32, #tpu.memory_space<vmem>>, %arg6: memref<128x384xf32, #tpu.memory_space<vmem>>, %arg7: memref<1x384xf32, #tpu.memory_space<vmem>>, %arg8: memref<1x8x128xf32, #tpu.memory_space<vmem>>, %arg9: memref<256x512xf32, #tpu.memory_space<vmem>>, %arg10: memref<1x512xf32, #tpu.memory_space<vmem>>, %arg11: memref<1x128x8xf32, #tpu.memory_space<vmem>>, %arg12: memref<1x1x8xf32, #tpu.memory_space<vmem>>, %arg13: memref<1x8x8xf32, #tpu.memory_space<vmem>>, %arg14: memref<2x8x128xf32, #tpu.memory_space<vmem>>, %arg15: memref<2x8x128xf32, #tpu.memory_space<vmem>>, %arg16: memref<8x128xf32, #tpu.memory_space<vmem>>) attributes {dimension_semantics = [#tpu.dimension_semantics<arbitrary>, #tpu.dimension_semantics<arbitrary>], iteration_bounds = array<i64: 5, 1>, scalar_prefetch = 0 : i64, scratch_operands = 2 : i64, tpu.core_type = #tpu.core_type<tc>, window_params = [{transform_indices = @transform_0, window_bounds = array<i64: 1, 8, 384>}, {transform_indices = @transform_1, window_bounds = array<i64: 1, 8, 1>}, {pipeline_mode = #tpu.pipeline_mode<synchronous>, transform_indices = @transform_2, window_bounds = array<i64: 2, 8, 128>}, {pipeline_mode = #tpu.pipeline_mode<synchronous>, transform_indices = @transform_3, window_bounds = array<i64: 1, 384>}, {pipeline_mode = #tpu.pipeline_mode<synchronous>, transform_indices = @transform_4, window_bounds = array<i64: 128, 384>}, {pipeline_mode = #tpu.pipeline_mode<synchronous>, transform_indices = @transform_5, window_bounds = array<i64: 1, 384>}, {transform_indices = @transform_6, window_bounds = array<i64: 1, 8, 128>}, {pipeline_mode = #tpu.pipeline_mode<synchronous>, transform_indices = @transform_7, window_bounds = array<i64: 256, 512>}, {pipeline_mode = #tpu.pipeline_mode<synchronous>, transform_indices = @transform_8, window_bounds = array<i64: 1, 512>}, {transform_indices = @transform_9, window_bounds = array<i64: 1, 128, 8>}, {transform_indices = @transform_10, window_bounds = array<i64: 1, 1, 8>}, {transform_indices = @transform_11, window_bounds = array<i64: 1, 8, 8>}, {pipeline_mode = #tpu.pipeline_mode<synchronous>, transform_indices = @transform_12, window_bounds = array<i64: 2, 8, 128>}]} {
    %c0_i32 = arith.constant 0 : i32
    %0 = arith.cmpi eq, %arg0, %c0_i32 : i32
    %c0_i32_0 = arith.constant 0 : i32
    %1 = arith.cmpi eq, %arg1, %c0_i32_0 : i32
    %2 = arith.andi %0, %1 : i1
    %3 = arith.extui %2 : i1 to i32
    %c0_i32_1 = arith.constant 0 : i32
    %4 = arith.cmpi ne, %3, %c0_i32_1 : i32
    scf.if %4 {
      %c0_16 = arith.constant 0 : index
      %c0_17 = arith.constant 0 : index
      %c0_18 = arith.constant 0 : index
      %25 = vector.load %arg4[%c0_16, %c0_17, %c0_18] : memref<2x8x128xf32, #tpu.memory_space<vmem>>, vector<2x8x128xf32>
      %c0_19 = arith.constant 0 : index
      %c0_20 = arith.constant 0 : index
      %c0_21 = arith.constant 0 : index
      %26 = vector.load %arg15[%c0_19, %c0_20, %c0_21] : memref<2x8x128xf32, #tpu.memory_space<vmem>>, vector<2x8x128xf32>
      tpu.vector_store %arg15[%c0_19, %c0_20, %c0_21], %25 {strides = array<i32>} : memref<2x8x128xf32, #tpu.memory_space<vmem>>, vector<2x8x128xf32>,
    } else {
    }
    %c0_i32_2 = arith.constant 0 : i32
    %5 = arith.cmpi eq, %arg1, %c0_i32_2 : i32
    %6 = arith.extui %5 : i1 to i32
    %c0_i32_3 = arith.constant 0 : i32
    %7 = arith.cmpi ne, %6, %c0_i32_3 : i32
    scf.if %7 {
      %c0_16 = arith.constant 0 : index
      %c0_17 = arith.constant 0 : index
      %c0_18 = arith.constant 0 : index
      %25 = vector.load %arg2[%c0_16, %c0_17, %c0_18] : memref<1x8x384xf32, #tpu.memory_space<vmem>>, vector<1x8x384xf32>
      %26 = vector.shape_cast %25 : vector<1x8x384xf32> to vector<8x384xf32>
      %c0_19 = arith.constant 0 : index
      %c0_20 = arith.constant 0 : index
      %c0_21 = arith.constant 0 : index
      %27 = vector.load %arg3[%c0_19, %c0_20, %c0_21] : memref<1x8x1xf32, #tpu.memory_space<vmem>>, vector<1x8x1xf32>
      %28 = vector.shape_cast %27 : vector<1x8x1xf32> to vector<8x1xf32>
      %29 = vector.broadcast %28 : vector<8x1xf32> to vector<8x384xf32>
      %30 = arith.mulf %26, %29 : vector<8x384xf32>
      %c0_22 = arith.constant 0 : index
      %c0_23 = arith.constant 0 : index
      %31 = vector.load %arg5[%c0_22, %c0_23] : memref<1x384xf32, #tpu.memory_space<vmem>>, vector<1x384xf32>
      %32 = vector.broadcast %31 : vector<1x384xf32> to vector<8x384xf32>
      %33 = arith.addf %30, %32 : vector<8x384xf32>
      %c0_24 = arith.constant 0 : index
      %c0_25 = arith.constant 0 : index
      %c0_26 = arith.constant 0 : index
      %34 = vector.load %arg15[%c0_24, %c0_25, %c0_26] : memref<2x8x128xf32, #tpu.memory_space<vmem>>, vector<1x8x128xf32>
      %35 = vector.shape_cast %34 : vector<1x8x128xf32> to vector<8x128xf32>
      %c0_27 = arith.constant 0 : index
      %c0_28 = arith.constant 0 : index
      %36 = vector.load %arg6[%c0_27, %c0_28] : memref<128x384xf32, #tpu.memory_space<vmem>>, vector<128x384xf32>
      %cst_29 = arith.constant dense<0.000000e+00> : vector<8x384xf32>
      %37 = tpu.matmul %35, %36, %cst_29 {dimension_numbers = #tpu.dot_dimension_numbers<[1], [0], [0], [1], [0, 0, 1, 1], [], []>} : vector<8x128xf32>, vector<128x384xf32>, vector<8x384xf32> -> vector<8x384xf32>
      %c0_30 = arith.constant 0 : index
      %c0_31 = arith.constant 0 : index
      %38 = vector.load %arg7[%c0_30, %c0_31] : memref<1x384xf32, #tpu.memory_space<vmem>>, vector<1x384xf32>
      %39 = vector.broadcast %38 : vector<1x384xf32> to vector<8x384xf32>
      %40 = arith.addf %37, %39 : vector<8x384xf32>
      %41 = vector.extract_strided_slice %33 {offsets = [0, 0], sizes = [8, 128], strides = [1, 1]} : vector<8x384xf32> to vector<8x128xf32>
      %42 = vector.extract_strided_slice %40 {offsets = [0, 0], sizes = [8, 128], strides = [1, 1]} : vector<8x384xf32> to vector<8x128xf32>
      %43 = arith.addf %41, %42 : vector<8x128xf32>
      %44 = arith.negf %43 : vector<8x128xf32>
      %45 = math.exp %44 : vector<8x128xf32>
      %cst_32 = arith.constant 1.000000e+00 : f32
      %46 = vector.broadcast %cst_32 : f32 to vector<8x128xf32>
      %47 = arith.addf %46, %45 : vector<8x128xf32>
      %48 = arith.divf %46, %47 : vector<8x128xf32>
      %49 = vector.extract_strided_slice %33 {offsets = [0, 128], sizes = [8, 128], strides = [1, 1]} : vector<8x384xf32> to vector<8x128xf32>
      %50 = vector.extract_strided_slice %40 {offsets = [0, 128], sizes = [8, 128], strides = [1, 1]} : vector<8x384xf32> to vector<8x128xf32>
      %51 = arith.addf %49, %50 : vector<8x128xf32>
      %52 = arith.negf %51 : vector<8x128xf32>
      %53 = math.exp %52 : vector<8x128xf32>
      %cst_33 = arith.constant 1.000000e+00 : f32
      %54 = vector.broadcast %cst_33 : f32 to vector<8x128xf32>
      %55 = arith.addf %54, %53 : vector<8x128xf32>
      %56 = arith.divf %54, %55 : vector<8x128xf32>
      %57 = vector.extract_strided_slice %33 {offsets = [0, 256], sizes = [8, 128], strides = [1, 1]} : vector<8x384xf32> to vector<8x128xf32>
      %58 = vector.extract_strided_slice %40 {offsets = [0, 256], sizes = [8, 128], strides = [1, 1]} : vector<8x384xf32> to vector<8x128xf32>
      %59 = arith.mulf %48, %58 : vector<8x128xf32>
      %60 = arith.addf %57, %59 : vector<8x128xf32>
      %61 = math.tanh %60 : vector<8x128xf32>
      %cst_34 = arith.constant 1.000000e+00 : f32
      %62 = vector.broadcast %cst_34 : f32 to vector<8x128xf32>
      %63 = arith.subf %62, %56 : vector<8x128xf32>
      %64 = arith.mulf %63, %61 : vector<8x128xf32>
      %65 = arith.mulf %56, %35 : vector<8x128xf32>
      %66 = arith.addf %64, %65 : vector<8x128xf32>
      %c0_35 = arith.constant 0 : index
      %c0_36 = arith.constant 0 : index
      %c0_37 = arith.constant 0 : index
      %67 = vector.load %arg15[%c0_35, %c0_36, %c0_37] : memref<2x8x128xf32, #tpu.memory_space<vmem>>, vector<1x8x128xf32>
      %68 = vector.shape_cast %67 : vector<1x8x128xf32> to vector<8x128xf32>
      %69 = vector.shape_cast %66 : vector<8x128xf32> to vector<1x8x128xf32>
      tpu.vector_store %arg15[%c0_35, %c0_36, %c0_37], %69 {strides = array<i32>} : memref<2x8x128xf32, #tpu.memory_space<vmem>>, vector<1x8x128xf32>,
      %c0_38 = arith.constant 0 : index
      %c0_39 = arith.constant 0 : index
      %c0_40 = arith.constant 0 : index
      %70 = vector.load %arg8[%c0_38, %c0_39, %c0_40] : memref<1x8x128xf32, #tpu.memory_space<vmem>>, vector<1x8x128xf32>
      %71 = vector.shape_cast %70 : vector<1x8x128xf32> to vector<8x128xf32>
      %72 = arith.mulf %66, %71 : vector<8x128xf32>
      %c1 = arith.constant 1 : index
      %c0_41 = arith.constant 0 : index
      %c0_42 = arith.constant 0 : index
      %73 = vector.load %arg15[%c1, %c0_41, %c0_42] : memref<2x8x128xf32, #tpu.memory_space<vmem>>, vector<1x8x128xf32>
      %74 = vector.shape_cast %73 : vector<1x8x128xf32> to vector<8x128xf32>
      %75 = tpu.concatenate %72, %74 in 1 : vector<8x128xf32>, vector<8x128xf32> -> vector<8x256xf32>
      %c0_43 = arith.constant 0 : index
      %c0_44 = arith.constant 0 : index
      %76 = vector.load %arg9[%c0_43, %c0_44] : memref<256x512xf32, #tpu.memory_space<vmem>>, vector<256x512xf32>
      %cst_45 = arith.constant dense<0.000000e+00> : vector<8x512xf32>
      %77 = tpu.matmul %75, %76, %cst_45 {dimension_numbers = #tpu.dot_dimension_numbers<[1], [0], [0], [1], [0, 0, 1, 1], [], []>} : vector<8x256xf32>, vector<256x512xf32>, vector<8x512xf32> -> vector<8x512xf32>
      %c0_46 = arith.constant 0 : index
      %c0_47 = arith.constant 0 : index
      %78 = vector.load %arg10[%c0_46, %c0_47] : memref<1x512xf32, #tpu.memory_space<vmem>>, vector<1x512xf32>
      %79 = vector.broadcast %78 : vector<1x512xf32> to vector<8x512xf32>
      %80 = arith.addf %77, %79 : vector<8x512xf32>
      %81 = vector.extract_strided_slice %80 {offsets = [0, 0], sizes = [8, 128], strides = [1, 1]} : vector<8x512xf32> to vector<8x128xf32>
      %82 = arith.negf %81 : vector<8x128xf32>
      %83 = math.exp %82 : vector<8x128xf32>
      %cst_48 = arith.constant 1.000000e+00 : f32
      %84 = vector.broadcast %cst_48 : f32 to vector<8x128xf32>
      %85 = arith.addf %84, %83 : vector<8x128xf32>
      %86 = arith.divf %84, %85 : vector<8x128xf32>
      %87 = vector.extract_strided_slice %80 {offsets = [0, 128], sizes = [8, 128], strides = [1, 1]} : vector<8x512xf32> to vector<8x128xf32>
      %88 = arith.negf %87 : vector<8x128xf32>
      %89 = math.exp %88 : vector<8x128xf32>
      %cst_49 = arith.constant 1.000000e+00 : f32
      %90 = vector.broadcast %cst_49 : f32 to vector<8x128xf32>
      %91 = arith.addf %90, %89 : vector<8x128xf32>
      %92 = arith.divf %90, %91 : vector<8x128xf32>
      %93 = vector.extract_strided_slice %80 {offsets = [0, 256], sizes = [8, 128], strides = [1, 1]} : vector<8x512xf32> to vector<8x128xf32>
      %94 = vector.extract_strided_slice %80 {offsets = [0, 384], sizes = [8, 128], strides = [1, 1]} : vector<8x512xf32> to vector<8x128xf32>
      %95 = arith.mulf %86, %94 : vector<8x128xf32>
      %96 = arith.addf %93, %95 : vector<8x128xf32>
      %97 = math.tanh %96 : vector<8x128xf32>
      %cst_50 = arith.constant 1.000000e+00 : f32
      %98 = vector.broadcast %cst_50 : f32 to vector<8x128xf32>
      %99 = arith.subf %98, %92 : vector<8x128xf32>
      %100 = arith.mulf %99, %97 : vector<8x128xf32>
      %101 = arith.mulf %92, %74 : vector<8x128xf32>
      %102 = arith.addf %100, %101 : vector<8x128xf32>
      %c1_51 = arith.constant 1 : index
      %c0_52 = arith.constant 0 : index
      %c0_53 = arith.constant 0 : index
      %103 = vector.load %arg15[%c1_51, %c0_52, %c0_53] : memref<2x8x128xf32, #tpu.memory_space<vmem>>, vector<1x8x128xf32>
      %104 = vector.shape_cast %103 : vector<1x8x128xf32> to vector<8x128xf32>
      %105 = vector.shape_cast %102 : vector<8x128xf32> to vector<1x8x128xf32>
      tpu.vector_store %arg15[%c1_51, %c0_52, %c0_53], %105 {strides = array<i32>} : memref<2x8x128xf32, #tpu.memory_space<vmem>>, vector<1x8x128xf32>,
      %c0_54 = arith.constant 0 : index
      %c0_55 = arith.constant 0 : index
      %106 = vector.load %arg16[%c0_54, %c0_55] : memref<8x128xf32, #tpu.memory_space<vmem>>, vector<8x128xf32>
      tpu.vector_store %arg16[%c0_54, %c0_55], %102 {strides = array<i32>} : memref<8x128xf32, #tpu.memory_space<vmem>>, vector<8x128xf32>,
    } else {
    }
    %c0 = arith.constant 0 : index
    %c0_4 = arith.constant 0 : index
    %8 = vector.load %arg16[%c0, %c0_4] : memref<8x128xf32, #tpu.memory_space<vmem>>, vector<8x128xf32>
    %c0_5 = arith.constant 0 : index
    %c0_6 = arith.constant 0 : index
    %c0_7 = arith.constant 0 : index
    %9 = vector.load %arg11[%c0_5, %c0_6, %c0_7] : memref<1x128x8xf32, #tpu.memory_space<vmem>>, vector<1x128x8xf32>
    %10 = vector.shape_cast %9 : vector<1x128x8xf32> to vector<128x8xf32>
    %cst = arith.constant dense<0.000000e+00> : vector<8x8xf32>
    %11 = tpu.matmul %8, %10, %cst {dimension_numbers = #tpu.dot_dimension_numbers<[1], [0], [0], [1], [0, 0, 1, 1], [], []>} : vector<8x128xf32>, vector<128x8xf32>, vector<8x8xf32> -> vector<8x8xf32>
    %c0_8 = arith.constant 0 : index
    %c0_9 = arith.constant 0 : index
    %c0_10 = arith.constant 0 : index
    %12 = vector.load %arg12[%c0_8, %c0_9, %c0_10] : memref<1x1x8xf32, #tpu.memory_space<vmem>>, vector<1x1x8xf32>
    %13 = vector.shape_cast %12 : vector<1x1x8xf32> to vector<1x8xf32>
    %14 = vector.broadcast %13 : vector<1x8xf32> to vector<8x8xf32>
    %15 = arith.addf %11, %14 : vector<8x8xf32>
    %16 = math.tanh %15 : vector<8x8xf32>
    %c0_11 = arith.constant 0 : index
    %c0_12 = arith.constant 0 : index
    %c0_13 = arith.constant 0 : index
    %17 = vector.load %arg13[%c0_11, %c0_12, %c0_13] : memref<1x8x8xf32, #tpu.memory_space<vmem>>, vector<1x8x8xf32>
    %18 = vector.shape_cast %17 : vector<1x8x8xf32> to vector<8x8xf32>
    %19 = vector.shape_cast %16 : vector<8x8xf32> to vector<1x8x8xf32>
    tpu.vector_store %arg13[%c0_11, %c0_12, %c0_13], %19 {strides = array<i32>} : memref<1x8x8xf32, #tpu.memory_space<vmem>>, vector<1x8x8xf32>,
    %c4_i32 = arith.constant 4 : i32
    %20 = arith.cmpi eq, %arg0, %c4_i32 : i32
    %c0_i32_14 = arith.constant 0 : i32
    %21 = arith.cmpi eq, %arg1, %c0_i32_14 : i32
    %22 = arith.andi %20, %21 : i1
    %23 = arith.extui %22 : i1 to i32
    %c0_i32_15 = arith.constant 0 : i32
    %24 = arith.cmpi ne, %23, %c0_i32_15 : i32
    scf.if %24 {
      %c0_16 = arith.constant 0 : index
      %c0_17 = arith.constant 0 : index
      %c0_18 = arith.constant 0 : index
      %25 = vector.load %arg15[%c0_16, %c0_17, %c0_18] : memref<2x8x128xf32, #tpu.memory_space<vmem>>, vector<2x8x128xf32>
      %c0_19 = arith.constant 0 : index
      %c0_20 = arith.constant 0 : index
      %c0_21 = arith.constant 0 : index
      %26 = vector.load %arg14[%c0_19, %c0_20, %c0_21] : memref<2x8x128xf32, #tpu.memory_space<vmem>>, vector<2x8x128xf32>
      tpu.vector_store %arg14[%c0_19, %c0_20, %c0_21], %25 {strides = array<i32>} : memref<2x8x128xf32, #tpu.memory_space<vmem>>, vector<2x8x128xf32>,
    } else {
    }
    return
  }
  func.func @transform_0(%arg0: i32, %arg1: i32) -> (i32, i32, i32) {
    %c0_i32 = arith.constant 0 : i32
    %c0_i32_0 = arith.constant 0 : i32
    %c0_i32_1 = arith.constant 0 : i32
    return %arg0, %c0_i32, %c0_i32_0 : i32, i32, i32
  }
  func.func @transform_1(%arg0: i32, %arg1: i32) -> (i32, i32, i32) {
    %c0_i32 = arith.constant 0 : i32
    %c0_i32_0 = arith.constant 0 : i32
    %c0_i32_1 = arith.constant 0 : i32
    return %arg0, %c0_i32, %c0_i32_0 : i32, i32, i32
  }
  func.func @transform_2(%arg0: i32, %arg1: i32) -> (i32, i32, i32) {
    %c0_i32 = arith.constant 0 : i32
    %c0_i32_0 = arith.constant 0 : i32
    %c0_i32_1 = arith.constant 0 : i32
    %c0_i32_2 = arith.constant 0 : i32
    return %c0_i32, %c0_i32_0, %c0_i32_1 : i32, i32, i32
  }
  func.func @transform_3(%arg0: i32, %arg1: i32) -> (i32, i32) {
    %c0_i32 = arith.constant 0 : i32
    %c0_i32_0 = arith.constant 0 : i32
    %c0_i32_1 = arith.constant 0 : i32
    return %c0_i32, %c0_i32_0 : i32, i32
  }
  func.func @transform_4(%arg0: i32, %arg1: i32) -> (i32, i32) {
    %c0_i32 = arith.constant 0 : i32
    %c0_i32_0 = arith.constant 0 : i32
    %c0_i32_1 = arith.constant 0 : i32
    return %c0_i32, %c0_i32_0 : i32, i32
  }
  func.func @transform_5(%arg0: i32, %arg1: i32) -> (i32, i32) {
    %c0_i32 = arith.constant 0 : i32
    %c0_i32_0 = arith.constant 0 : i32
    %c0_i32_1 = arith.constant 0 : i32
    return %c0_i32, %c0_i32_0 : i32, i32
  }
  func.func @transform_6(%arg0: i32, %arg1: i32) -> (i32, i32, i32) {
    %c0_i32 = arith.constant 0 : i32
    %c0_i32_0 = arith.constant 0 : i32
    %c0_i32_1 = arith.constant 0 : i32
    return %arg0, %c0_i32, %c0_i32_0 : i32, i32, i32
  }
  func.func @transform_7(%arg0: i32, %arg1: i32) -> (i32, i32) {
    %c0_i32 = arith.constant 0 : i32
    %c0_i32_0 = arith.constant 0 : i32
    %c0_i32_1 = arith.constant 0 : i32
    return %c0_i32, %c0_i32_0 : i32, i32
  }
  func.func @transform_8(%arg0: i32, %arg1: i32) -> (i32, i32) {
    %c0_i32 = arith.constant 0 : i32
    %c0_i32_0 = arith.constant 0 : i32
    %c0_i32_1 = arith.constant 0 : i32
    return %c0_i32, %c0_i32_0 : i32, i32
  }
  func.func @transform_9(%arg0: i32, %arg1: i32) -> (i32, i32, i32) {
    %c0_i32 = arith.constant 0 : i32
    %c0_i32_0 = arith.constant 0 : i32
    %c0_i32_1 = arith.constant 0 : i32
    return %arg0, %c0_i32, %c0_i32_0 : i32, i32, i32
  }
  func.func @transform_10(%arg0: i32, %arg1: i32) -> (i32, i32, i32) {
    %c0_i32 = arith.constant 0 : i32
    %c0_i32_0 = arith.constant 0 : i32
    %c0_i32_1 = arith.constant 0 : i32
    return %arg0, %c0_i32, %c0_i32_0 : i32, i32, i32
  }
  func.func @transform_11(%arg0: i32, %arg1: i32) -> (i32, i32, i32) {
    %c0_i32 = arith.constant 0 : i32
    %c0_i32_0 = arith.constant 0 : i32
    %c0_i32_1 = arith.constant 0 : i32
    return %arg0, %c0_i32, %c0_i32_0 : i32, i32, i32
  }
  func.func @transform_12(%arg0: i32, %arg1: i32) -> (i32, i32, i32) {
    %c0_i32 = arith.constant 0 : i32
    %c0_i32_0 = arith.constant 0 : i32
    %c0_i32_1 = arith.constant 0 : i32
    %c0_i32_2 = arith.constant 0 : i32
    return %c0_i32, %c0_i32_0, %c0_i32_1 : i32, i32, i32
  }
}

</mosaic_0001>

<bundles_post_ra>
// kernel: tpu_custom_call.1
= control target key start
LH: loop header
LB: loop body
LE: loop exit
PB: predicated region body
PF: predicated region fallthrough
CT: control target
= control target key end

     0   :  { %s2242_s0 = inlined_call_operand.vmem [shape: f32[5,8,384], index: 0, kind: input, shape index: {}]   ;;  %s2243_s1 = inlined_call_operand.vmem [shape: f32[5,8,1], index: 1, kind: input, shape index: {}]   ;;  %s2244_s2 = inlined_call_operand.vmem [shape: f32[2,8,128], index: 2, kind: input, shape index: {}]   ;;  %s2245_s3 = inlined_call_operand.vmem [shape: f32[1,384], index: 3, kind: input, shape index: {}]   ;;  %s2246_s4 = inlined_call_operand.vmem [shape: f32[128,384], index: 4, kind: input, shape index: {}]   ;;  %s2247_s5 = inlined_call_operand.vmem [shape: f32[1,384], index: 5, kind: input, shape index: {}]   ;;  %s2248_s6 = inlined_call_operand.vmem [shape: f32[5,8,128], index: 6, kind: input, shape index: {}]   ;;  %s2249_s7 = inlined_call_operand.hbm [shape: f32[256,512], index: 7, kind: input, shape index: {}]   ;;  %s2250_s8 = inlined_call_operand.vmem [shape: f32[1,512], index: 8, kind: input, shape index: {}]   ;;  %s2251_s9 = inlined_call_operand.vmem [shape: f32[5,128,8], index: 9, kind: input, shape index: {}]   ;;  %s2252_s10 = inlined_call_operand.vmem [shape: f32[5,1,8], index: 10, kind: input, shape index: {}]   ;;  %s2253_s11 = inlined_call_operand.hbm [shape: f32[5,8,8], index: 11, kind: output, shape index: {0}]   ;;  %s2254_s12 = inlined_call_operand.hbm [shape: f32[2,8,128], index: 12, kind: output, shape index: {1}]  }
   0x1   :  { %2266 = sst [smem:[#allocation21_spill]] %s2243_s1 }
   0x2   :  { %2267 = sst [smem:[#allocation22_spill]] %s2249_s7 }
   0x3   :  { %2268 = sst [smem:[#allocation23_spill]] %s2253_s11 }
   0x4   :  { %2269 = sst [smem:[#allocation24_spill]] %s2254_s12 }
   0x5   :  { %18 = vsyncpa [#allocation5], 0 }
   0x6   :  { %19 = vsyncpa [#allocation6], 0 }
   0x7   :  { %21 = vsyncpa [#allocation6 + $0x1], 0 }
   0x8   :  { %22 = vsyncpa [#allocation9], 0  ;;  %s1813_s21 = smov 0   ;;  %s1815_s22 = smov 0  }
   0x9   :  { %s1817_s23 = smov 0   ;;  %s1819_s24 = smov 0  }
   0xa   :  { %s1821_s25 = smov 0   ;;  %s1823_s26 = smov 0  }
   0xb LB: > { %2270 = sst [smem:[#allocation13_spill]] %s1716_s21  ;;  %s1365_s27 = sadd.s32 4294967295, %s1736_s26   ;;  %s1736_s26 = sphi %s1823_s26, %s28_s26   ;;  %s1732_s25 = sphi %s1821_s25, %s2297_s25   ;;  %s1728_s24 = sphi %s1819_s24, %s2300_s24   ;;  %s1724_s23 = sphi %s1817_s23, %s2295_s23   ;;  %s1720_s22 = sphi %s1815_s22, %s2299_s22   ;;  %s1716_s21 = sphi %s1813_s21, %s2298_s21  }
   0xc   : > { %2271 = sst [smem:[#allocation14_spill]] %s1724_s23  ;;  %s1366_s28 = sadd.s32 4294967294, %s1736_s26  }
   0xd   : > { %2272 = sst [smem:[#allocation15_spill]] %s1732_s25  ;;  %s40_s29 = sadd.s32 1, %s1732_s25 }
   0xe   : > { %2273 = sst [smem:[#allocation16_spill]] %s1736_s26  ;;  %s303_s30 = sadd.s32 1, %s1724_s23 }
   0xf   : > { %p42_p0 = scmp.ge.s32.totalorder %s40_s29, 5  ;;  %p313_p1 = scmp.ne.s32.totalorder %s1724_s23, %s1720_s22 }
  0x10   : > { %p1849_p2 = scmp.eq.s32.totalorder %s1365_s27, 4  ;;  %p319_p3 = scmp.ne.s32.totalorder %s1720_s22, %s1716_s21 }
  0x11   : > { %s2302_s29 = smov (%p42_p0, %s40_s29), 0  ;;  %p320_p5 = scmp.eq.s32.totalorder %s1366_s28, 4 }
  0x12   : > { %s2274_s13 = scalar_select %p1849_p2, 1, 0 }
  0x13   : > { %2276 = sst [smem:[#allocation18_spill]] %s2302_s29  ;;  %p1859_p4 = por %p1849_p2, %p313_p1 }
  0x14   : > { %2275 = sst [smem:[#allocation17_spill]] %s2274_s13  ;;  %s300_s15 = ssub.s32 %s1732_s25, %s2302_s29 }
  0x15   : > { %p1367_p6 = scmp.ge.s32.totalorder %s1736_s26, 1  ;;  %p301_p7 = scmp.eq.s32.totalorder %s300_s15, 0 }
  0x16   : > { %p1866_p8 = por %p320_p5, %p319_p3  ;;  %p348_p9 = scmp.lt.s32.totalorder %s1736_s26, 6 }
  0x17   : > { %s1872_s17 = scalar_select %p301_p7, %s1724_s23, %s303_s30  }
  0x18   : > { %s2278_s16 = scalar_select %p1866_p8, 1, 0 }
  0x19   : > { %2280 = sst [smem:[#allocation20_spill]] %s1872_s17  ;;  %p1874_p10 = pnand %p1367_p6, %p348_p9 }
  0x1a   : > { %2279 = sst [smem:[#allocation19_spill]] %s2278_s16  ;;  %p1878_p11 = scmp.eq.s32.totalorder %s1365_s27, 0 }
  0x1b   : > { %p1509_p12 = pneg %p1874_p10  ;;  %s1738_s20 = smov [#allocation4]  }
  0x1c   : > { %s372_s28 = sshll.u32 %s1738_s20, 4  ;;  %s373_s28 = int_to_ptr.vmem [resolvable:$true] %s372_s28 }
  0x1d   : > { %p1510_p13 = pnand %p1878_p11, %p1509_p12  ;;  %s1613_s30 = scalar_lea.vmem %s373_s28, 16384 }
  0x1e   : > { %p1614_p1 = scmp.ne.s32.totalorder %s373_s28, %s1613_s30  ;;  %p1621_p6 = scmp.lt.s32.totalorder %s373_s28, %s373_s28 }
  0x1f   : > { %p1604_p0 = pneg %p1510_p13  ;;  %p1622_p7 = scmp.lt.s32.totalorder %s1613_s30, %s1613_s30 }
  0x21   : > { %p1616_p3 = pnand %p1614_p1, %p1604_p0  ;;  %p1623_p9 = por %p1622_p7, %p1621_p6 }
  0x23   : > { %p1617_p5 = pneg %p1616_p3 }
  0x25   : > { %p1624_p8 = pnand %p1623_p9, %p1617_p5 }
  0x27   : > { %1627 = shalt.err (!%p1624_p8)
}
  0x28   : > { %s1739_s27 = smov 512   ;;  %s1740_s15 = smov 32  }
  0x29   : > { %s2283_s7 = sld [smem:[#allocation22_spill]] }
  0x2b   : > { %427 = sbr.rel (%p1874_p10) target bundleno = 854 (0x356), region = 64 }
  0x2f   : > { %1512 = dma.hbm_to_vmem [thread:$0]  (!%p1510_p13), %s2283_s7, 16384, %s373_s28, [#allocation5], %s1739_s27, %s1739_s27, %s1740_s15  }
  0x30   : > { %1703 = dma.done.wait (%p1878_p11), [#allocation5], 16384  }
  0x31   : > { %1705 = vsyncadd (%p1878_p11), [#allocation5], 4294950912  ;;  %s2257_s20 = sand.u32 1, %s1720_s22   ;;  %p485_p8 = scmp.lt.s32.totalorder %s1728_s24, 4 }
  0x32   : > { %s1899_s30 = sshll.u32 %s2257_s20, 3  ;;  %p506_p12 = scmp.eq.s32.totalorder %s1728_s24, 0 }
  0x33   : > { %s1903_s25 = scalar_select %p485_p8, %s1728_s24, 4  ;;  %v512_v0 = vld [vmem:[%s2244_s2] sm:$0xff] (%p506_p12)  ;;  %v513_v1 = vld [vmem:[%s2244_s2 + $0x8] sm:$0xff] (%p506_p12) }
  0x34   : > { %s2284_s1 = sld [smem:[#allocation21_spill]]  ;;  %514 = vst [vmem:[#allocation2] sm:$0xff] (%p506_p12), %v512_v0  ;;  %515 = vst [vmem:[#allocation2 + $0x8] sm:$0xff] (%p506_p12), %v513_v1 }
  0x35   : > { %s1498_s29 = smul.u32 24, %s1903_s25  ;;  %s1374_s18 = sshll.u32 %s1903_s25, 3 }
  0x36   : > { %s1915_s20 = scalar_lea.vmem %s2248_s6, %s1374_s18  ;;  %s1391_s21 = sshll.u32 %s1903_s25, 7 }
  0x37   : > { %s1920_s16 = scalar_lea.vmem %s2242_s0, %s1498_s29  ;;  %s1926_s13 = scalar_lea.vmem %s2251_s9, %s1391_s21 }
  0x38   : > { %s505_s28 = scalar_lea.vmem %s2252_s10, %s1903_s25  ;;  %511 = sbr.rel (!%p506_p12) target bundleno = 61 (0x3d), region = 72 }
  0x3a   : > { %s1910_s27 = scalar_lea.vmem %s2284_s1, %s1374_s18  ;;  %s482_s1 = scalar_lea.vmem [#allocation7], %s1899_s30 }
  0x3d PF: > { %v598_v2 = vld [vmem:[%s2246_s4 + $0x170] sm:$0xff]  ;;  %v597_v3 = vld [vmem:[%s2246_s4 + $0x168] sm:$0xff]  ;;  %v595_v4 = vld [vmem:[%s2246_s4 + $0x158] sm:$0xff]  ;;  %v1741_v6 = vmov 0.0   ;;  %vm1742_vm0 = vmmov 0   ;;  %v1743_v10 = vmov 0  }
  0x3e   : > { %617 = vmatprep.subr.mxu0 %v598_v2  ;;  %v594_v5 = vld [vmem:[%s2246_s4 + $0x150] sm:$0xff]  ;;  %681 = vmatprep.mubr.f32.mxu0 %v1741_v6  ;;  %v592_v7 = vld [vmem:[%s2246_s4 + $0x140] sm:$0xff]  ;;  %v591_v8 = vld [vmem:[%s2246_s4 + $0x138] sm:$0xff]  ;;  %p1194_p10 = scmp.eq.s32.totalorder %s1728_s24, 4  ;;  %vm1192_vm1 = vcmask 64512  }
  0x3f   : > { %618 = vmatpush1.msra.mxu0 %v597_v3  ;;  %1428 = vmatprep.subr.mxu1 %v1741_v6  ;;  %v589_v9 = vld [vmem:[%s2246_s4 + $0x128] sm:$0xff]  ;;  %v588_v11 = vld [vmem:[%s2246_s4 + $0x120] sm:$0xff]  ;;  %v586_v12 = vld [vmem:[%s2246_s4 + $0x110] sm:$0xff] }
  0x40   : > { %619 = vmatprep.subr.mxu0 %v595_v4  ;;  %1460 = vmatprep.mubr.msk.f32.mxu1 %vm1742_vm0, %v1741_v6  ;;  %v585_v13 = vld [vmem:[%s2246_s4 + $0x108] sm:$0xff]  ;;  %v583_v14 = vld [vmem:[%s2246_s4 + $0xf8] sm:$0xff]  ;;  %v582_v15 = vld [vmem:[%s2246_s4 + $0xf0] sm:$0xff] }
  0x41   : > { %620 = vmatpush1.msra.mxu0 %v594_v5  ;;  %1579 = vset.pattern.permute.xlu0 %v1743_v10  ;;  %v580_v16 = vld [vmem:[%s2246_s4 + $0xe0] sm:$0xff]  ;;  %v579_v17 = vld [vmem:[%s2246_s4 + $0xd8] sm:$0xff]  ;;  %v577_v20 = vld [vmem:[%s2246_s4 + $0xc8] sm:$0xff] }
  0x42   : > { %621 = vmatprep.subr.mxu0 %v592_v7  ;;  %v599_v18 = vld [vmem:[%s2246_s4 + $0x178] sm:$0xff]  ;;  %v596_v19 = vld [vmem:[%s2246_s4 + $0x160] sm:$0xff]  ;;  %v593_v22 = vld [vmem:[%s2246_s4 + $0x148] sm:$0xff] }
  0x43   : > { %622 = vmatpush1.msra.mxu0 %v591_v8  ;;  %1429 = vmatpush3.msra.mxu1 %v599_v18  ;;  %v576_v21 = vld [vmem:[%s2246_s4 + $0xc0] sm:$0xff]  ;;  %v574_v23 = vld [vmem:[%s2246_s4 + $0xb0] sm:$0xff]  ;;  %v573_v24 = vld [vmem:[%s2246_s4 + $0xa8] sm:$0xff] }
  0x44   : > { %623 = vmatprep.subr.mxu0 %v589_v9  ;;  %1430 = vmatprep.subr.mxu1 %v1741_v6  ;;  %v590_v25 = vld [vmem:[%s2246_s4 + $0x130] sm:$0xff]  ;;  %v571_v26 = vld [vmem:[%s2246_s4 + $0x98] sm:$0xff]  ;;  %v568_v29 = vld [vmem:[%s2246_s4 + $0x80] sm:$0xff] }
  0x45   : > { %624 = vmatpush1.msra.mxu0 %v588_v11  ;;  %1431 = vmatpush3.msra.mxu1 %v596_v19  ;;  %v570_v27 = vld [vmem:[%s2246_s4 + $0x90] sm:$0xff]  ;;  %v587_v28 = vld [vmem:[%s2246_s4 + $0x118] sm:$0xff]  ;;  %v584_v31 = vld [vmem:[%s2246_s4 + $0x100] sm:$0xff] }
  0x46   : > { %625 = vmatprep.subr.mxu0 %v586_v12  ;;  %1432 = vmatprep.subr.mxu1 %v1741_v6  ;;  %v567_v30 = vld [vmem:[%s2246_s4 + $0x78] sm:$0xff]  ;;  %v565_v32 = vld [vmem:[%s2246_s4 + $0x68] sm:$0xff]  ;;  %v564_v33 = vld [vmem:[%s2246_s4 + $0x60] sm:$0xff] }
  0x47   : > { %626 = vmatpush1.msra.mxu0 %v585_v13  ;;  %1433 = vmatpush3.msra.mxu1 %v593_v22  ;;  %v581_v34 = vld [vmem:[%s2246_s4 + $0xe8] sm:$0xff]  ;;  %v562_v35 = vld [vmem:[%s2246_s4 + $0x50] sm:$0xff]  ;;  %v559_v38 = vld [vmem:[%s2246_s4 + $0x38] sm:$0xff] }
  0x48   : > { %627 = vmatprep.subr.mxu0 %v583_v14  ;;  %1434 = vmatprep.subr.mxu1 %v1741_v6  ;;  %v561_v36 = vld [vmem:[%s2246_s4 + $0x48] sm:$0xff]  ;;  %v578_v37 = vld [vmem:[%s2246_s4 + $0xd0] sm:$0xff]  ;;  %v575_v40 = vld [vmem:[%s2246_s4 + $0xb8] sm:$0xff] }
  0x49   : > { %628 = vmatpush1.msra.mxu0 %v582_v15  ;;  %1435 = vmatpush3.msra.mxu1 %v590_v25  ;;  %v558_v39 = vld [vmem:[%s2246_s4 + $0x30] sm:$0xff]  ;;  %v556_v41 = vld [vmem:[%s2246_s4 + $0x20] sm:$0xff]  ;;  %v555_v42 = vld [vmem:[%s2246_s4 + $0x18] sm:$0xff] }
  0x4a   : > { %629 = vmatprep.subr.mxu0 %v580_v16  ;;  %1436 = vmatprep.subr.mxu1 %v1741_v6  ;;  %v572_v43 = vld [vmem:[%s2246_s4 + $0xa0] sm:$0xff]  ;;  %v553_v44 = vld [vmem:[%s2246_s4 + $0x8] sm:$0xff]  ;;  %v566_v48 = vld [vmem:[%s2246_s4 + $0x70] sm:$0xff] }
  0x4b   : > { %630 = vmatpush1.msra.mxu0 %v579_v17  ;;  %1437 = vmatpush3.msra.mxu1 %v587_v28  ;;  %v552_v45 = vld [vmem:[%s2246_s4] sm:$0xff]  ;;  %v569_v46 = vld [vmem:[%s2246_s4 + $0x88] sm:$0xff]  ;;  %v845_v50 = vld [vmem:[#allocation4 + $0x1e8] sm:$0xff] }
  0x4c   : > { %631 = vmatprep.subr.mxu0 %v577_v20  ;;  %1438 = vmatprep.subr.mxu1 %v1741_v6  ;;  %v2081_v47 = vld [vmem:[#allocation2] sm:$0xff]  ;;  %v563_v51 = vld [vmem:[%s2246_s4 + $0x58] sm:$0xff]  ;;  %v844_v52 = vld [vmem:[#allocation4 + $0x1e0] sm:$0xff] }
  0x4d   : > { %632 = vmatpush1.msra.mxu0 %v576_v21  ;;  %1439 = vmatpush3.msra.mxu1 %v584_v31  ;;  %v522_v49 = vld [vmem:[%s1910_s27] sm:$0xff]  ;;  %v841_v53 = vld [vmem:[#allocation4 + $0x1c8] sm:$0xff]  ;;  %v557_v55 = vld [vmem:[%s2246_s4 + $0x28] sm:$0xff] }
  0x4e   : > { %633 = vmatprep.subr.mxu0 %v574_v23  ;;  %1440 = vmatprep.subr.mxu1 %v1741_v6  ;;  %v560_v54 = vld [vmem:[%s2246_s4 + $0x40] sm:$0xff]  ;;  %v554_v56 = vld [vmem:[%s2246_s4 + $0x10] sm:$0xff]  ;;  %v847_v57 = vld [vmem:[#allocation4 + $0x1f8] sm:$0xff] }
  0x4f   : > { %634 = vmatpush1.msra.mxu0 %v573_v24  ;;  %1441 = vmatpush3.msra.mxu1 %v581_v34  ;;  %v846_v58 = vld [vmem:[#allocation4 + $0x1f0] sm:$0xff]  ;;  %v843_v59 = vld [vmem:[#allocation4 + $0x1d8] sm:$0xff]  ;;  %v840_v60 = vld [vmem:[#allocation4 + $0x1c0] sm:$0xff] }
  0x50   : > { %635 = vmatprep.subr.mxu0 %v571_v26  ;;  %1442 = vmatprep.subr.mxu1 %v1741_v6  ;;  %v842_v61 = vld [vmem:[#allocation4 + $0x1d0] sm:$0xff]  ;;  %v837_v62 = vld [vmem:[#allocation4 + $0x1a8] sm:$0xff]  ;;  %v839_v63 = vld [vmem:[#allocation4 + $0x1b8] sm:$0xff] }
  0x51   : > { %636 = vmatpush1.msra.mxu0 %v570_v27  ;;  %1443 = vmatpush3.msra.mxu1 %v578_v37  ;;  %v836_v0 = vld [vmem:[#allocation4 + $0x1a0] sm:$0xff]  ;;  %v838_v1 = vld [vmem:[#allocation4 + $0x1b0] sm:$0xff]  ;;  %v833_v2 = vld [vmem:[#allocation4 + $0x188] sm:$0xff] }
  0x52   : > { %637 = vmatprep.subr.mxu0 %v568_v29  ;;  %1444 = vmatprep.subr.mxu1 %v1741_v6  ;;  %v835_v3 = vld [vmem:[#allocation4 + $0x198] sm:$0xff]  ;;  %v832_v4 = vld [vmem:[#allocation4 + $0x180] sm:$0xff]  ;;  %v834_v5 = vld [vmem:[#allocation4 + $0x190] sm:$0xff] }
  0x53   : > { %638 = vmatpush1.msra.mxu0 %v567_v30  ;;  %1445 = vmatpush3.msra.mxu1 %v575_v40  ;;  %v829_v7 = vld [vmem:[#allocation4 + $0x168] sm:$0xff]  ;;  %v831_v8 = vld [vmem:[#allocation4 + $0x178] sm:$0xff]  ;;  %v828_v9 = vld [vmem:[#allocation4 + $0x160] sm:$0xff] }
  0x54   : > { %639 = vmatprep.subr.mxu0 %v565_v32  ;;  %1446 = vmatprep.subr.mxu1 %v1741_v6  ;;  %v830_v10 = vld [vmem:[#allocation4 + $0x170] sm:$0xff]  ;;  %v825_v11 = vld [vmem:[#allocation4 + $0x148] sm:$0xff]  ;;  %v827_v12 = vld [vmem:[#allocation4 + $0x158] sm:$0xff] }
  0x55   : > { %640 = vmatpush1.msra.mxu0 %v564_v33  ;;  %1447 = vmatpush3.msra.mxu1 %v572_v43  ;;  %v824_v13 = vld [vmem:[#allocation4 + $0x140] sm:$0xff]  ;;  %v826_v14 = vld [vmem:[#allocation4 + $0x150] sm:$0xff]  ;;  %v821_v15 = vld [vmem:[#allocation4 + $0x128] sm:$0xff] }
  0x56   : > { %641 = vmatprep.subr.mxu0 %v562_v35  ;;  %1448 = vmatprep.subr.mxu1 %v1741_v6  ;;  %v823_v16 = vld [vmem:[#allocation4 + $0x138] sm:$0xff]  ;;  %v820_v17 = vld [vmem:[#allocation4 + $0x120] sm:$0xff]  ;;  %v822_v18 = vld [vmem:[#allocation4 + $0x130] sm:$0xff] }
  0x57   : > { %642 = vmatpush1.msra.mxu0 %v561_v36  ;;  %1449 = vmatpush3.msra.mxu1 %v569_v46  ;;  %v817_v19 = vld [vmem:[#allocation4 + $0x108] sm:$0xff]  ;;  %v819_v20 = vld [vmem:[#allocation4 + $0x118] sm:$0xff]  ;;  %v816_v21 = vld [vmem:[#allocation4 + $0x100] sm:$0xff] }
  0x58   : > { %643 = vmatprep.subr.mxu0 %v559_v38  ;;  %1450 = vmatprep.subr.mxu1 %v1741_v6  ;;  %v818_v22 = vld [vmem:[#allocation4 + $0x110] sm:$0xff]  ;;  %v813_v23 = vld [vmem:[#allocation4 + $0xe8] sm:$0xff]  ;;  %v815_v24 = vld [vmem:[#allocation4 + $0xf8] sm:$0xff] }
  0x59   : > { %644 = vmatpush1.msra.mxu0 %v558_v39  ;;  %1451 = vmatpush3.msra.mxu1 %v566_v48  ;;  %v812_v25 = vld [vmem:[#allocation4 + $0xe0] sm:$0xff]  ;;  %v814_v26 = vld [vmem:[#allocation4 + $0xf0] sm:$0xff]  ;;  %v809_v27 = vld [vmem:[#allocation4 + $0xc8] sm:$0xff] }
  0x5a   : > { %645 = vmatprep.subr.mxu0 %v556_v41  ;;  %525 = vperm.xlu0 %1579, %v522_v49   ;;  %v811_v28 = vld [vmem:[#allocation4 + $0xd8] sm:$0xff]  ;;  %v808_v29 = vld [vmem:[#allocation4 + $0xc0] sm:$0xff]  ;;  %v810_v30 = vld [vmem:[#allocation4 + $0xd0] sm:$0xff] }
  0x5b   : > { %646 = vmatpush1.msra.mxu0 %v555_v42  ;;  %1452 = vmatprep.subr.mxu1 %v1741_v6  ;;  %v805_v31 = vld [vmem:[#allocation4 + $0xa8] sm:$0xff]  ;;  %v807_v32 = vld [vmem:[#allocation4 + $0xb8] sm:$0xff]  ;;  %v804_v33 = vld [vmem:[#allocation4 + $0xa0] sm:$0xff] }
  0x5c   : > { %647 = vmatprep.subr.mxu0 %v553_v44  ;;  %1453 = vmatpush3.msra.mxu1 %v563_v51  ;;  %v806_v34 = vld [vmem:[#allocation4 + $0xb0] sm:$0xff]  ;;  %v801_v35 = vld [vmem:[#allocation4 + $0x88] sm:$0xff]  ;;  %v803_v36 = vld [vmem:[#allocation4 + $0x98] sm:$0xff] }
  0x5d   : > { %648 = vmatpush1.msra.mxu0 %v552_v45  ;;  %1454 = vmatprep.subr.mxu1 %v1741_v6  ;;  %v800_v37 = vld [vmem:[#allocation4 + $0x80] sm:$0xff]  ;;  %v802_v38 = vld [vmem:[#allocation4 + $0x90] sm:$0xff]  ;;  %v797_v39 = vld [vmem:[#allocation4 + $0x68] sm:$0xff] }
  0x5e   : > { %682 = vmatmul.mubr.f32.vlgmr.msra.gmra.mxu0 %v2081_v47  ;;  %934 = vmatprep.subr.mxu0 %v845_v50  ;;  %v799_v40 = vld [vmem:[#allocation4 + $0x78] sm:$0xff]  ;;  %v796_v41 = vld [vmem:[#allocation4 + $0x60] sm:$0xff]  ;;  %v798_v42 = vld [vmem:[#allocation4 + $0x70] sm:$0xff] }
  0x5f   : > { %935 = vmatpush1.msra.mxu0 %v844_v52  ;;  %1455 = vmatpush3.msra.mxu1 %v560_v54  ;;  %v793_v43 = vld [vmem:[#allocation4 + $0x48] sm:$0xff]  ;;  %v795_v44 = vld [vmem:[#allocation4 + $0x58] sm:$0xff]  ;;  %v792_v45 = vld [vmem:[#allocation4 + $0x40] sm:$0xff] }
  0x60   : > { %936 = vmatprep.subr.mxu0 %v841_v53  ;;  %1456 = vmatprep.subr.mxu1 %v1741_v6  ;;  %v794_v46 = vld [vmem:[#allocation4 + $0x50] sm:$0xff]  ;;  %v789_v48 = vld [vmem:[#allocation4 + $0x28] sm:$0xff]  ;;  %v791_v49 = vld [vmem:[#allocation4 + $0x38] sm:$0xff] }
  0x61   : > { %1457 = vmatpush3.msra.mxu1 %v557_v55  ;;  %937 = vmatpush1.msra.mxu0 %v840_v60  ;;  %v788_v50 = vld [vmem:[#allocation4 + $0x20] sm:$0xff]  ;;  %v790_v51 = vld [vmem:[#allocation4 + $0x30] sm:$0xff]  ;;  %v785_v52 = vld [vmem:[#allocation4 + $0x8] sm:$0xff] }
  0x62   : > { %1458 = vmatprep.subr.mxu1 %v1741_v6  ;;  %938 = vmatprep.subr.mxu0 %v837_v62  ;;  %v787_v53 = vld [vmem:[#allocation4 + $0x18] sm:$0xff]  ;;  %v784_v54 = vld [vmem:[#allocation4] sm:$0xff]  ;;  %v786_v55 = vld [vmem:[#allocation4 + $0x10] sm:$0xff] }
  0x63   : > { %1459 = vmatpush3.msra.mxu1 %v554_v56  ;;  %939 = vmatpush1.msra.mxu0 %v836_v0  ;;  %v909_v56 = vld [vmem:[#allocation4 + $0x3e8] sm:$0xff]  ;;  %v904_v62 = vld [vmem:[#allocation4 + $0x3c0] sm:$0xff] }
  0x64   : > { %1461 = vmatmul.mubr.f32.vlgmr.msra.gmra.mxu1 %v2081_v47  ;;  %1005 = vmatprep.subr.mxu1 %v847_v57  ;;  %v911_v57 = vld [vmem:[#allocation4 + $0x3f8] sm:$0xff]  ;;  %v905_v60 = vld [vmem:[#allocation4 + $0x3c8] sm:$0xff] }
  0x65   : > { %1006 = vmatpush1.msra.mxu1 %v846_v58  ;;  %940 = vmatprep.subr.mxu0 %v833_v2  ;;  %v908_v58 = vld [vmem:[#allocation4 + $0x3e0] sm:$0xff]  ;;  %v901_v0 = vld [vmem:[#allocation4 + $0x3a8] sm:$0xff] }
  0x66   : > { %1007 = vmatprep.subr.mxu1 %v843_v59  ;;  %941 = vmatpush1.msra.mxu0 %v832_v4  ;;  %v910_v59 = vld [vmem:[#allocation4 + $0x3f0] sm:$0xff]  ;;  %v900_v2 = vld [vmem:[#allocation4 + $0x3a0] sm:$0xff]  ;;  %v897_v4 = vld [vmem:[#allocation4 + $0x388] sm:$0xff] }
  0x67   : > { %1008 = vmatpush1.msra.mxu1 %v842_v61  ;;  %942 = vmatprep.subr.mxu0 %v829_v7  ;;  %v907_v61 = vld [vmem:[#allocation4 + $0x3d8] sm:$0xff]  ;;  %v896_v7 = vld [vmem:[#allocation4 + $0x380] sm:$0xff] }
  0x68   : > { %1009 = vmatprep.subr.mxu1 %v839_v63  ;;  %943 = vmatpush1.msra.mxu0 %v828_v9  ;;  %v906_v63 = vld [vmem:[#allocation4 + $0x3d0] sm:$0xff]  ;;  %v893_v9 = vld [vmem:[#allocation4 + $0x368] sm:$0xff] }
  0x69   : > { %1010 = vmatpush1.msra.mxu1 %v838_v1  ;;  %944 = vmatprep.subr.mxu0 %v825_v11  ;;  %v903_v1 = vld [vmem:[#allocation4 + $0x3b8] sm:$0xff]  ;;  %v892_v11 = vld [vmem:[#allocation4 + $0x360] sm:$0xff] }
  0x6a   : > { %1011 = vmatprep.subr.mxu1 %v835_v3  ;;  %945 = vmatpush1.msra.mxu0 %v824_v13  ;;  %v902_v3 = vld [vmem:[#allocation4 + $0x3b0] sm:$0xff]  ;;  %v889_v13 = vld [vmem:[#allocation4 + $0x348] sm:$0xff] }
  0x6b   : > { %1012 = vmatpush1.msra.mxu1 %v834_v5  ;;  %946 = vmatprep.subr.mxu0 %v821_v15  ;;  %v899_v5 = vld [vmem:[#allocation4 + $0x398] sm:$0xff]  ;;  %v888_v15 = vld [vmem:[#allocation4 + $0x340] sm:$0xff] }
  0x6c   : > { %1013 = vmatprep.subr.mxu1 %v831_v8  ;;  %947 = vmatpush1.msra.mxu0 %v820_v17  ;;  %v898_v8 = vld [vmem:[#allocation4 + $0x390] sm:$0xff]  ;;  %v885_v17 = vld [vmem:[#allocation4 + $0x328] sm:$0xff] }
  0x6d   : > { %1014 = vmatpush1.msra.mxu1 %v830_v10  ;;  %948 = vmatprep.subr.mxu0 %v817_v19  ;;  %v895_v10 = vld [vmem:[#allocation4 + $0x378] sm:$0xff]  ;;  %v884_v19 = vld [vmem:[#allocation4 + $0x320] sm:$0xff] }
  0x6e   : > { %1015 = vmatprep.subr.mxu1 %v827_v12  ;;  %949 = vmatpush1.msra.mxu0 %v816_v21  ;;  %v894_v12 = vld [vmem:[#allocation4 + $0x370] sm:$0xff]  ;;  %v881_v21 = vld [vmem:[#allocation4 + $0x308] sm:$0xff] }
  0x6f   : > { %1016 = vmatpush1.msra.mxu1 %v826_v14  ;;  %950 = vmatprep.subr.mxu0 %v813_v23  ;;  %v891_v14 = vld [vmem:[#allocation4 + $0x358] sm:$0xff]  ;;  %v880_v23 = vld [vmem:[#allocation4 + $0x300] sm:$0xff] }
  0x70   : > { %1017 = vmatprep.subr.mxu1 %v823_v16  ;;  %951 = vmatpush1.msra.mxu0 %v812_v25  ;;  %v890_v16 = vld [vmem:[#allocation4 + $0x350] sm:$0xff]  ;;  %v877_v25 = vld [vmem:[#allocation4 + $0x2e8] sm:$0xff] }
  0x71   : > { %1018 = vmatpush1.msra.mxu1 %v822_v18  ;;  %952 = vmatprep.subr.mxu0 %v809_v27  ;;  %v887_v18 = vld [vmem:[#allocation4 + $0x338] sm:$0xff]  ;;  %v876_v27 = vld [vmem:[#allocation4 + $0x2e0] sm:$0xff] }
  0x72   : > { %1019 = vmatprep.subr.mxu1 %v819_v20  ;;  %953 = vmatpush1.msra.mxu0 %v808_v29  ;;  %v886_v20 = vld [vmem:[#allocation4 + $0x330] sm:$0xff]  ;;  %v873_v29 = vld [vmem:[#allocation4 + $0x2c8] sm:$0xff] }
  0x73   : > { %1020 = vmatpush1.msra.mxu1 %v818_v22  ;;  %954 = vmatprep.subr.mxu0 %v805_v31  ;;  %v883_v22 = vld [vmem:[#allocation4 + $0x318] sm:$0xff]  ;;  %v872_v31 = vld [vmem:[#allocation4 + $0x2c0] sm:$0xff] }
  0x74   : > { %1021 = vmatprep.subr.mxu1 %v815_v24  ;;  %955 = vmatpush1.msra.mxu0 %v804_v33  ;;  %v882_v24 = vld [vmem:[#allocation4 + $0x310] sm:$0xff]  ;;  %v869_v33 = vld [vmem:[#allocation4 + $0x2a8] sm:$0xff] }
  0x75   : > { %1022 = vmatpush1.msra.mxu1 %v814_v26  ;;  %956 = vmatprep.subr.mxu0 %v801_v35  ;;  %v879_v26 = vld [vmem:[#allocation4 + $0x2f8] sm:$0xff]  ;;  %v868_v35 = vld [vmem:[#allocation4 + $0x2a0] sm:$0xff] }
  0x76   : > { %1023 = vmatprep.subr.mxu1 %v811_v28  ;;  %957 = vmatpush1.msra.mxu0 %v800_v37  ;;  %v878_v28 = vld [vmem:[#allocation4 + $0x2f0] sm:$0xff]  ;;  %v865_v37 = vld [vmem:[#allocation4 + $0x288] sm:$0xff] }
  0x77   : > { %1024 = vmatpush1.msra.mxu1 %v810_v30  ;;  %958 = vmatprep.subr.mxu0 %v797_v39  ;;  %v875_v30 = vld [vmem:[#allocation4 + $0x2d8] sm:$0xff]  ;;  %v864_v39 = vld [vmem:[#allocation4 + $0x280] sm:$0xff] }
  0x78   : > { %1025 = vmatprep.subr.mxu1 %v807_v32  ;;  %959 = vmatpush1.msra.mxu0 %v796_v41  ;;  %v874_v32 = vld [vmem:[#allocation4 + $0x2d0] sm:$0xff]  ;;  %v861_v41 = vld [vmem:[#allocation4 + $0x268] sm:$0xff] }
  0x79   : > { %1026 = vmatpush1.msra.mxu1 %v806_v34  ;;  %960 = vmatprep.subr.mxu0 %v793_v43  ;;  %v871_v34 = vld [vmem:[#allocation4 + $0x2b8] sm:$0xff]  ;;  %v860_v43 = vld [vmem:[#allocation4 + $0x260] sm:$0xff] }
  0x7a   : > { %1027 = vmatprep.subr.mxu1 %v803_v36  ;;  %961 = vmatpush1.msra.mxu0 %v792_v45  ;;  %v870_v36 = vld [vmem:[#allocation4 + $0x2b0] sm:$0xff]  ;;  %v857_v45 = vld [vmem:[#allocation4 + $0x248] sm:$0xff] }
  0x7b   : > { %1028 = vmatpush1.msra.mxu1 %v802_v38  ;;  %962 = vmatprep.subr.mxu0 %v789_v48  ;;  %v867_v38 = vld [vmem:[#allocation4 + $0x298] sm:$0xff]  ;;  %v856_v48 = vld [vmem:[#allocation4 + $0x240] sm:$0xff] }
  0x7c   : > { %1029 = vmatprep.subr.mxu1 %v799_v40  ;;  %963 = vmatpush1.msra.mxu0 %v788_v50  ;;  %v866_v40 = vld [vmem:[#allocation4 + $0x290] sm:$0xff]  ;;  %v853_v50 = vld [vmem:[#allocation4 + $0x228] sm:$0xff] }
  0x7d   : > { %1030 = vmatpush1.msra.mxu1 %v798_v42  ;;  %964 = vmatprep.subr.mxu0 %v785_v52  ;;  %v863_v42 = vld [vmem:[#allocation4 + $0x278] sm:$0xff]  ;;  %v852_v52 = vld [vmem:[#allocation4 + $0x220] sm:$0xff] }
  0x7e   : > { %1031 = vmatprep.subr.mxu1 %v795_v44  ;;  %965 = vmatpush1.msra.mxu0 %v784_v54  ;;  %v862_v44 = vld [vmem:[#allocation4 + $0x270] sm:$0xff]  ;;  %v849_v54 = vld [vmem:[#allocation4 + $0x208] sm:$0xff] }
  0x7f   : > { %1032 = vmatpush1.msra.mxu1 %v794_v46  ;;  %966 = vmatprep.subr.mxu0 %v909_v56  ;;  %v859_v46 = vld [vmem:[#allocation4 + $0x258] sm:$0xff]  ;;  %v848_v56 = vld [vmem:[#allocation4 + $0x200] sm:$0xff] }
  0x80   : > { %1033 = vmatprep.subr.mxu1 %v791_v49  ;;  %967 = vmatpush2.msra.mxu0 %v908_v58  ;;  %v858_v49 = vld [vmem:[#allocation4 + $0x250] sm:$0xff] }
  0x81   : > { %1034 = vmatpush1.msra.mxu1 %v790_v51  ;;  %968 = vmatprep.subr.mxu0 %v905_v60  ;;  %v855_v51 = vld [vmem:[#allocation4 + $0x238] sm:$0xff]  ;;  %v850_v58 = vld [vmem:[#allocation4 + $0x210] sm:$0xff] }
  0x82   : > { %1035 = vmatprep.subr.mxu1 %v787_v53  ;;  %969 = vmatpush2.msra.mxu0 %v904_v62  ;;  %v854_v53 = vld [vmem:[#allocation4 + $0x230] sm:$0xff] }
  0x83   : > { %1036 = vmatpush1.msra.mxu1 %v786_v55  ;;  %970 = vmatprep.subr.mxu0 %v901_v0  ;;  %v851_v55 = vld [vmem:[#allocation4 + $0x218] sm:$0xff]  ;;  %v531_v62 = vld [vmem:[%s2245_s3] sm:$0x7] }
  0x84   : > { %1037 = vmatprep.subr.mxu1 %v911_v57  ;;  %971 = vmatpush2.msra.mxu0 %v900_v2  ;;  %v2107_v57 = vld [vmem:[#allocation2 + $0x8] sm:$0xff]  ;;  %v519_v0 = vld [vmem:[%s1920_s16] sm:$0xff] }
  0x85   : > { %1038 = vmatpush2.msra.mxu1 %v910_v59  ;;  %972 = vmatprep.subr.mxu0 %v897_v4  ;;  %v533_v59 = vlaneseq }
  0x86   : > { %1039 = vmatprep.subr.mxu1 %v907_v61  ;;  %973 = vmatpush2.msra.mxu0 %v896_v7 }
  0x87   : > { %1040 = vmatpush2.msra.mxu1 %v906_v63  ;;  %974 = vmatprep.subr.mxu0 %v893_v9  ;;  %v2112_v60 = vshrl.u32 %v533_v59, 7  ;;  %v1100_v59 = vld [vmem:[%s1926_s13 + $0x10] sm:$0xff] }
  0x88   : > { %1041 = vmatprep.subr.mxu1 %v903_v1  ;;  %975 = vmatpush2.msra.mxu0 %v892_v11  ;;  %v600_v1 = vld [vmem:[%s2247_s5] sm:$0x7] }
  0x89   : > { %1042 = vmatpush2.msra.mxu1 %v902_v3  ;;  %976 = vmatprep.subr.mxu0 %v889_v13  ;;  %v2115_v61 = vsub.s32 0, %v2112_v60 }
  0x8a   : > { %1043 = vmatprep.subr.mxu1 %v899_v5  ;;  %977 = vmatpush2.msra.mxu0 %v888_v15  ;;  %v2127_v5 = vsub.s32 1, %v2112_v60 }
  0x8b   : > { %1044 = vmatpush2.msra.mxu1 %v898_v8  ;;  %978 = vmatprep.subr.mxu0 %v885_v17  ;;  %v536_v2 = vrot.slane %v531_v62, %v2115_v61  ;;  %v605_v4 = vrot.slane %v600_v1, %v2115_v61  ;;  %v520_v8 = vld [vmem:[%s1920_s16 + $0x8] sm:$0xff] }
  0x8c   : > { %1045 = vmatprep.subr.mxu1 %v895_v10  ;;  %979 = vmatpush2.msra.mxu0 %v884_v19  ;;  %v609_v11 = vrot.slane %v600_v1, %v2127_v5  ;;  %v540_v13 = vrot.slane %v531_v62, %v2127_v5 }
  0x8d   : > { %1046 = vmatpush2.msra.mxu1 %v894_v12  ;;  %980 = vmatprep.subr.mxu0 %v881_v21 }
  0x8e   : > { %1047 = vmatprep.subr.mxu1 %v891_v14  ;;  %981 = vmatpush2.msra.mxu0 %v880_v23 }
  0x8f   : > { %1048 = vmatpush2.msra.mxu1 %v890_v16  ;;  %982 = vmatprep.subr.mxu0 %v877_v25  ;;  %v2133_v25 = vsub.s32 2, %v2112_v60 }
  0x90   : > { %1049 = vmatprep.subr.mxu1 %v887_v18  ;;  %983 = vmatpush2.msra.mxu0 %v876_v27 }
  0x91   : > { %1050 = vmatpush2.msra.mxu1 %v886_v20  ;;  %984 = vmatprep.subr.mxu0 %v873_v29  ;;  %v544_v29 = vrot.slane %v531_v62, %v2133_v25  ;;  %v1099_v62 = vld [vmem:[%s1926_s13 + $0x8] sm:$0xff] }
  0x92   : > { %1051 = vmatprep.subr.mxu1 %v883_v22  ;;  %985 = vmatpush2.msra.mxu0 %v872_v31 }
  0x93   : > { %1052 = vmatpush2.msra.mxu1 %v882_v24  ;;  %986 = vmatprep.subr.mxu0 %v869_v33 }
  0x94   : > { %1053 = vmatprep.subr.mxu1 %v879_v26  ;;  %987 = vmatpush2.msra.mxu0 %v868_v35  ;;  %v613_v26 = vrot.slane %v600_v1, %v2133_v25 }
  0x95   : > { %1054 = vmatpush2.msra.mxu1 %v878_v28  ;;  %988 = vmatprep.subr.mxu0 %v865_v37  ;;  %v521_v28 = vld [vmem:[%s1920_s16 + $0x10] sm:$0xff] }
  0x96   : > { %1055 = vmatprep.subr.mxu1 %v875_v30  ;;  %989 = vmatpush2.msra.mxu0 %v864_v39 }
  0x97   : > { %1056 = vmatpush2.msra.mxu1 %v874_v32  ;;  %990 = vmatprep.subr.mxu0 %v861_v41 }
  0x98   : > { %1057 = vmatprep.subr.mxu1 %v871_v34  ;;  %991 = vmatpush2.msra.mxu0 %v860_v43 }
  0x99   : > { %1058 = vmatpush2.msra.mxu1 %v870_v36  ;;  %992 = vmatprep.subr.mxu0 %v857_v45  ;;  %v1113_v45 = vld [vmem:[%s1926_s13 + $0x78] sm:$0xff] }
  0x9a   : > { %1059 = vmatprep.subr.mxu1 %v867_v38  ;;  %993 = vmatpush2.msra.mxu0 %v856_v48  ;;  %v1110_v48 = vld [vmem:[%s1926_s13 + $0x60] sm:$0xff] }
  0x9b   : > { %1060 = vmatpush2.msra.mxu1 %v866_v40  ;;  %994 = vmatprep.subr.mxu0 %v853_v50  ;;  %v1108_v50 = vld [vmem:[%s1926_s13 + $0x50] sm:$0xff] }
  0x9c   : > { %1061 = vmatprep.subr.mxu1 %v863_v42  ;;  %995 = vmatpush2.msra.mxu0 %v852_v52  ;;  %v780_v42 = vld [vmem:[%s1915_s20] sm:$0xff] }
  0x9d   : > { %1062 = vmatpush2.msra.mxu1 %v862_v44  ;;  %996 = vmatprep.subr.mxu0 %v849_v54  ;;  %v1106_v52 = vld [vmem:[%s1926_s13 + $0x40] sm:$0xff]  ;;  %v1104_v54 = vld [vmem:[%s1926_s13 + $0x30] sm:$0xff] }
  0x9e   : > { %1063 = vmatprep.subr.mxu1 %v859_v46  ;;  %997 = vmatpush2.msra.mxu0 %v848_v56  ;;  %v1112_v46 = vld [vmem:[%s1926_s13 + $0x70] sm:$0xff]  ;;  %v1102_v56 = vld [vmem:[%s1926_s13 + $0x20] sm:$0xff] }
  0x9f   : > { %1064 = vmatpush2.msra.mxu1 %v858_v49  ;;  %998 = vmatprep.mubr.f32.mxu0 %v2107_v57  ;;  %v1109_v49 = vld [vmem:[%s1926_s13 + $0x58] sm:$0xff] }
  0xa0   : > { %1065 = vmatprep.subr.mxu1 %v855_v51  ;;  %1069 = vmatprep.mubr.f32.mxu1 %v2107_v57  ;;  %v1107_v51 = vld [vmem:[%s1926_s13 + $0x48] sm:$0xff] }
  0xa1   : > { %1066 = vmatpush2.msra.mxu1 %v854_v53  ;;  %1463 = vmatprep.subr.mxu0 %v1741_v6  ;;  %v1105_v53 = vld [vmem:[%s1926_s13 + $0x38] sm:$0xff] }
  0xa2   : > { %1067 = vmatprep.subr.mxu1 %v851_v55  ;;  %v1103_v55 = vld [vmem:[%s1926_s13 + $0x28] sm:$0xff] }
  0xa3   : > { %1068 = vmatpush2.msra.mxu1 %v850_v58  ;;  %v1101_v58 = vld [vmem:[%s1926_s13 + $0x18] sm:$0xff] }
  0xd5   : > { %v526_v63 = vpop.permute.xlu0 %525 }
  0xd6   : > { %v528_v3 = vmul.f32 %v526_v63, %v519_v0  ;;  %v529_v14 = vmul.f32 %v526_v63, %v520_v8  ;;  %v530_v30 = vmul.f32 %v526_v63, %v521_v28  ;;  %v1098_v63 = vld [vmem:[%s1926_s13] sm:$0xff] }
  0xd7   : > { %v912_v0 = vld [vmem:[%s2250_s8] sm:$0xf] }
  0xd8   : > { %v548_v7 = vadd.f32 %v536_v2, %v528_v3  ;;  %v549_v18 = vadd.f32 %v540_v13, %v529_v14  ;;  %v550_v34 = vadd.f32 %v544_v29, %v530_v30  ;;  %v917_v1 = vrot.slane %v912_v0, %v2115_v61 }
  0xd9   : > { %v925_v61 = vrot.slane %v912_v0, %v2133_v25  ;;  %v1383_v25 = vld [vmem:[%s505_s28] ss:$0 sm:$0xff] }
 0x11e   : > { %v683_v9 = vpop.f32.mrf.mxu0 }
 0x11f   : > { %v684_v10 = vadd.f32 %v683_v9, %v605_v4 }
 0x120   : > { %v685_v12 = vpop.f32.mrf.mxu0 }
 0x121   : > { %v758_v15 = vadd.f32 %v684_v10, %v548_v7  ;;  %v686_v17 = vadd.f32 %v685_v12, %v609_v11  ;;  %v921_v7 = vrot.slane %v912_v0, %v2127_v5 }
 0x123   : > { %v1379_v16 = vmul.f32 -1.442695, %v758_v15  ;;  %v765_v19 = vadd.f32 %v686_v17, %v549_v18 }
 0x124   : > { %v754_v20 = vpop.f32.mrf.mxu1 }
 0x125   : > { %1580 = vpow2.f32 %v1379_v16  ;;  %v1380_v22 = vmul.f32 -1.442695, %v765_v19  ;;  %v755_v32 = vadd.f32 %v754_v20, %v613_v26 }
 0x126   : > { %v1462_v21 = vpop.f32.mrf.mxu1 }
 0x127   : > { %1582 = vpow2.f32 %v1380_v22 }
 0x132   : > { %v1581_v23 = vpop.eup %1580 }
 0x133   : > { %v762_v24 = vadd.f32 1.0, %v1581_v23 }
 0x134   : > { %v1583_v27 = vpop.eup %1582 }
 0x135   : > { %1584 = vrcp.f32 %v762_v24  ;;  %v769_v31 = vadd.f32 1.0, %v1583_v27 }
 0x137   : > { %1586 = vrcp.f32 %v769_v31 }
 0x142   : > { %v1585_v33 = vpop.eup %1584 }
 0x143   : > { %v772_v35 = vmul.f32 %v1585_v33, %v755_v32 }
 0x144   : > { %v1587_v37 = vpop.eup %1586 }
 0x145   : > { %v773_v36 = vadd.f32 %v772_v35, %v550_v34  ;;  %v775_v38 = vsub.f32 1.0, %v1587_v37  ;;  %v777_v41 = vmul.f32 %v1587_v37, %v2081_v47  ;;  %v1111_v47 = vld [vmem:[%s1926_s13 + $0x68] sm:$0xff] }
 0x147   : > { %1588 = vtanh.f32 %v773_v36 }
 0x154   : > { %v1589_v39 = vpop.eup %1588 }
 0x155   : > { %v776_v40 = vmul.f32 %v1589_v39, %v775_v38 }
 0x157   : > { %v778_v43 = vadd.f32 %v777_v41, %v776_v40 }
 0x159   : > { %779 = vst [vmem:[#allocation2] sm:$0xff] %v778_v43  ;;  %v781_v44 = vmul.f32 %v780_v42, %v778_v43 }
 0x15b   : > { %999 = vmatmul.mubr.f32.vlgmr.msra.gmra.mxu0 %v781_v44  ;;  %1070 = vmatmul.mubr.f32.vlgmr.msra.gmra.mxu1 %v781_v44 }
 0x15c   : > { %1495 = vmatprep.mubr.msk.f32.mxu0 %vm1742_vm0, %v1741_v6  ;;  %1464 = vmatpush3.msra.mxu0 %v1113_v45 }
 0x15d   : > { %1465 = vmatprep.subr.mxu0 %v1741_v6 }
 0x15e   : > { %1466 = vmatpush3.msra.mxu0 %v1112_v46 }
 0x15f   : > { %1467 = vmatprep.subr.mxu0 %v1741_v6 }
 0x160   : > { %1468 = vmatpush3.msra.mxu0 %v1111_v47  ;;  %v1199_v32 = vld [vmem:[#allocation2] sm:$0xff] (%p1194_p10) }
 0x161   : > { %1469 = vmatprep.subr.mxu0 %v1741_v6  ;;  %1201 = vst [vmem:[#allocation8] sm:$0xff] (%p1194_p10), %v1199_v32 }
 0x162   : > { %1470 = vmatpush3.msra.mxu0 %v1110_v48 }
 0x163   : > { %1471 = vmatprep.subr.mxu0 %v1741_v6 }
 0x164   : > { %1472 = vmatpush3.msra.mxu0 %v1109_v49 }
 0x165   : > { %1473 = vmatprep.subr.mxu0 %v1741_v6 }
 0x166   : > { %1474 = vmatpush3.msra.mxu0 %v1108_v50 }
 0x167   : > { %1475 = vmatprep.subr.mxu0 %v1741_v6 }
 0x168   : > { %1476 = vmatpush3.msra.mxu0 %v1107_v51 }
 0x169   : > { %1477 = vmatprep.subr.mxu0 %v1741_v6 }
 0x16a   : > { %1478 = vmatpush3.msra.mxu0 %v1106_v52 }
 0x16b   : > { %1479 = vmatprep.subr.mxu0 %v1741_v6 }
 0x16c   : > { %1480 = vmatpush3.msra.mxu0 %v1105_v53 }
 0x16d   : > { %1481 = vmatprep.subr.mxu0 %v1741_v6 }
 0x16e   : > { %1482 = vmatpush3.msra.mxu0 %v1104_v54 }
 0x16f   : > { %1483 = vmatprep.subr.mxu0 %v1741_v6 }
 0x170   : > { %1484 = vmatpush3.msra.mxu0 %v1103_v55 }
 0x171   : > { %1485 = vmatprep.subr.mxu0 %v1741_v6 }
 0x172   : > { %1486 = vmatpush3.msra.mxu0 %v1102_v56 }
 0x173   : > { %1487 = vmatprep.subr.mxu0 %v1741_v6 }
 0x174   : > { %1488 = vmatpush3.msra.mxu0 %v1101_v58 }
 0x175   : > { %1489 = vmatprep.subr.mxu0 %v1741_v6 }
 0x176   : > { %1490 = vmatpush3.msra.mxu0 %v1100_v59 }
 0x177   : > { %1491 = vmatprep.subr.mxu0 %v1741_v6 }
 0x178   : > { %1492 = vmatpush3.msra.mxu0 %v1099_v62 }
 0x179   : > { %1493 = vmatprep.subr.mxu0 %v1741_v6  ;;  %v928_v6 = vsub.s32 3, %v2112_v60 }
 0x17a   : > { %1494 = vmatpush3.msra.mxu0 %v1098_v63 }
 0x17b   : > { %v929_v15 = vrot.slane %v912_v0, %v928_v6 }
 0x21b   : > { %v1000_v2 = vpop.f32.mrf.mxu0  ;;  %v1071_v13 = vpop.f32.mrf.mxu1 }
 0x21c   : > { %v1001_v3 = vadd.f32 %v1000_v2, %v917_v1  ;;  %v1072_v19 = vadd.f32 %v1071_v13, %v925_v61 }
 0x21d   : > { %v1002_v8 = vpop.f32.mrf.mxu0  ;;  %v1073_v16 = vpop.f32.mrf.mxu1 }
 0x21e   : > { %v1381_v4 = vmul.f32 -1.442695, %v1001_v3  ;;  %v1003_v9 = vadd.f32 %v1002_v8, %v921_v7  ;;  %v1074_v18 = vadd.f32 %v1073_v16, %v929_v15 }
 0x220   : > { %1590 = vpow2.f32 %v1381_v4  ;;  %v1382_v10 = vmul.f32 -1.442695, %v1003_v9 }
 0x222   : > { %1592 = vpow2.f32 %v1382_v10 }
 0x22d   : > { %v1591_v11 = vpop.eup %1590 }
 0x22e   : > { %v1079_v12 = vadd.f32 1.0, %v1591_v11 }
 0x22f   : > { %v1593_v14 = vpop.eup %1592 }
 0x230   : > { %1594 = vrcp.f32 %v1079_v12  ;;  %v1085_v17 = vadd.f32 1.0, %v1593_v14 }
 0x232   : > { %1596 = vrcp.f32 %v1085_v17 }
 0x23d   : > { %v1595_v5 = vpop.eup %1594 }
 0x23e   : > { %v1088_v20 = vmul.f32 %v1595_v5, %v1074_v18 }
 0x23f   : > { %v1597_v22 = vpop.eup %1596 }
 0x240   : > { %v1089_v21 = vadd.f32 %v1088_v20, %v1072_v19  ;;  %v1091_v23 = vsub.f32 1.0, %v1597_v22  ;;  %v1093_v26 = vmul.f32 %v1597_v22, %v2107_v57 }
 0x242   : > { %1598 = vtanh.f32 %v1089_v21 }
 0x24f   : > { %v1599_v60 = vpop.eup %1598 }
 0x250   : > { %v1092_v24 = vmul.f32 %v1599_v60, %v1091_v23 }
 0x252   : > { %v1094_v27 = vadd.f32 %v1093_v26, %v1092_v24 }
 0x254   : > { %1095 = vst [vmem:[#allocation2 + $0x8] sm:$0xff] %v1094_v27  ;;  %1496 = vmatmul.mubr.f32.vlgmr.msra.gmra.mxu0 %v1094_v27 }
 0x25b   : > { %v1200_v57 = vld [vmem:[#allocation2 + $0x8] sm:$0xff] (%p1194_p10) }
 0x25c   : > { %1202 = vst [vmem:[#allocation8 + $0x8] sm:$0xff] (%p1194_p10), %v1200_v57 }
 0x314   : > { %v1187_v28 = vpop.f32.mrf.mxu0 }
 0x315   : > { %v1188_v29 = vadd.f32 %v1383_v25, %v1187_v28 }
 0x316   : > { %v1497_v30 = vpop.f32.mrf.mxu0 }
 0x317   : > { %1600 = vtanh.f32 %v1188_v29 }
 0x321   : > { %1198 = sbr.rel (!%p1194_p10) target bundleno = 806 (0x326), region = 80 }
 0x324   : > { %v1601_v31 = vpop.eup %1600 }
 0x325   : > { %1193 = vst.msk [vmem:[%s482_s1] sm:$0xff] %vm1192_vm1, %v1601_v31 }
 0x326 PF: > { %s1386_s25 = sshll.u32 %s1728_s24, 7  ;;  %s2285_s26 = sld [smem:[#allocation23_spill]] }
 0x327   : > { %s1217_s17 = sshll.u32 %s482_s1, 4  ;;  %s2287_s29 = sand.u32 1, %s1720_s22   ;;  %s1218_s17 = int_to_ptr.vmem [resolvable:$true] %s1217_s17 }
 0x328   : > { %s1204_s19 = scalar_lea.sflag [#allocation6], %s2287_s29  ;;  %s1628_s7 = scalar_lea.vmem %s1218_s17, 128 }
 0x329   : > { %p1629_p11 = scmp.ne.s32.totalorder %s1218_s17, %s1628_s7  ;;  %s1744_s18 = smov [#allocation7]  }
 0x32a   : > { %s1632_s15 = sshll.u32 %s1744_s18, 4  ;;  %s1633_s15 = int_to_ptr.vmem [resolvable:$false] %s1632_s15 }
 0x32b   : > { %p1630_p13 = pnand %p1629_p11, %p1859_p4  ;;  %s1634_s23 = scalar_lea.vmem %s1633_s15, 256 }
 0x32c   : > { %s2286_s11 = smov %s2285_s26  ;;  %s1215_s27 = scalar_lea.hbm %s2285_s26, %s1386_s25 }
 0x32d   : > { %p1631_p0 = pneg %p1630_p13  ;;  %p1635_p1 = scmp.lt.s32.totalorder %s1218_s17, %s1633_s15 }
 0x32e   : > { %p1636_p3 = scmp.lt.s32.totalorder %s1634_s23, %s1628_s7 }
 0x330   : > { %p1637_p5 = por %p1636_p3, %p1635_p1 }
 0x332   : > { %p1638_p6 = pnand %p1637_p5, %p1631_p0 }
 0x334   : > { %1641 = shalt.err (!%p1638_p6)
}
 0x335   : > { %s1642_s24 = scalar_lea.hbm %s1215_s27, 128  ;;  %s1646_s16 = scalar_lea.hbm %s2286_s11, 640 }
 0x336   : > { %p1643_p7 = scmp.ne.s32.totalorder %s1215_s27, %s1642_s24  ;;  %p1647_p12 = scmp.lt.s32.totalorder %s1215_s27, %s2286_s11 }
 0x337   : > { %p1648_p10 = scmp.lt.s32.totalorder %s1646_s16, %s1642_s24 }
 0x338   : > { %p1644_p9 = pnand %p1643_p7, %p1859_p4 }
 0x339   : > { %p1649_p11 = por %p1648_p10, %p1647_p12 }
 0x33a   : > { %p1645_p8 = pneg %p1644_p9 }
 0x33c   : > { %p1650_p13 = pnand %p1649_p11, %p1645_p8 }
 0x33e   : > { %1653 = shalt.err (!%p1650_p13)
}
 0x33f   : > { %1503 = dma.vmem_to_hbm [thread:$0]  (%p1859_p4), %s1218_s17, 128, %s1215_s27, %s1204_s19  }
 0x340   : > { %s1745_s25 = smov [#allocation8]  }
 0x341   : > { %s1227_s28 = sshll.u32 %s1745_s25, 4  ;;  %s1228_s28 = int_to_ptr.vmem [resolvable:$true] %s1227_s28 }
 0x342   : > { %s1654_s21 = scalar_lea.vmem %s1228_s28, 256  ;;  %p1661_p5 = scmp.lt.s32.totalorder %s1228_s28, %s1228_s28 }
 0x343   : > { %p1655_p0 = scmp.ne.s32.totalorder %s1228_s28, %s1654_s21  ;;  %p1662_p6 = scmp.lt.s32.totalorder %s1654_s21, %s1654_s21 }
 0x345   : > { %p1656_p1 = pnand %p1655_p0, %p1849_p2  ;;  %p1663_p7 = por %p1662_p6, %p1661_p5 }
 0x347   : > { %p1657_p3 = pneg %p1656_p1 }
 0x349   : > { %p1664_p9 = pnand %p1663_p7, %p1657_p3 }
 0x34b   : > { %1667 = shalt.err (!%p1664_p9)
}
 0x34c   : > { %s1746_s26 = smov 128   ;;  %s1747_s29 = smov 8  }
 0x34d   : > { %s2289_s17 = sld [smem:[#allocation24_spill]] }
 0x353   : > { %1505 = dma.vmem_to_hbm [thread:$0]  (%p1849_p2), %s1228_s28, 256, %s2289_s17, [#allocation9], %s1746_s26, %s1746_s26, %s1747_s29  }
 0x354   : > { %1707 = dma.done.wait (%p1849_p2), [#allocation9], 256  }
 0x355   : > { %1709 = vsyncadd (%p1849_p2), [#allocation9], 4294967040 }
 0x356 PF: > { %s2290_s19 = sld [smem:[#allocation16_spill]] }
 0x357   : > { %s2291_s7 = sld [smem:[#allocation13_spill]] }
 0x358   : > { %s2292_s18 = sld [smem:[#allocation19_spill]] }
 0x35c   : > { %p1521_p4 = scmp.ge.s32.totalorder %s2290_s19, 2 }
 0x35d   : > { %s1246_s15 = sand.u32 1, %s2291_s7  }
 0x35e   : > { %p2293_p8 = scmp.ne.s32.totalorder %s2292_s18, 0  ;;  %s1247_s23 = scalar_lea.sflag [#allocation6], %s1246_s15 }
 0x360   : > { %p1514_p12 = pnand %p1521_p4, %p2293_p8 }
 0x362   : > { %p1515_p10 = pneg %p1514_p12 }
 0x364   : > { %1711 = dma.done.wait (%p1515_p10), %s1247_s23, 128  }
 0x365   : > { %1713 = vsyncadd (%p1515_p10), %s1247_s23, 4294967168  ;;  %s28_s26 = sadd.s32 1, %s2290_s19   ;;  %s2294_s24 = sld [smem:[#allocation14_spill]] }
 0x366   : > { %p25_p11 = scmp.ge.s32.totalorder %s28_s26, 7   ;;  %s2295_s23 = sld [smem:[#allocation20_spill]] }
 0x367   : > { %s2296_s1 = sld [smem:[#allocation15_spill]]  ;;  %s2298_s21 = smov %s1720_s22 }
 0x368   : > { %s2297_s25 = sld [smem:[#allocation18_spill]] }
 0x369   :  { %27 = sbr.rel (!%p25_p11) target bundleno = 11 (0xb), region = 137 }
 0x36b   : > { %s2299_s22 = smov %s2294_s24 }
 0x36d   : > { %s2300_s24 = smov %s2296_s1 }
 0x36e   :  { %1252 = vsyncpa [#allocation5], 1 }
 0x36f   :  { %1254 = vsyncpa [#allocation5 + $0x1], 1 }
 0x370   :  { %1255 = vsyncpa [#allocation6], 1 }
 0x371   :  { %1257 = vsyncpa [#allocation6 + $0x1], 1 }
 0x372   :  { %1258 = vsyncpa [#allocation9], 1 }

</bundles_post_ra>
